<compile_context>
chip_gen: v7x
topology: tpu7x:2x2x1
jax: 0.10.0
libtpu: 0.0.40
codegen_flags: <defaults>
</compile_context>

<pallas_src>
import jax
import jax.numpy as jnp
import numpy as np
from jax import lax
from jax.experimental import pallas as pl
from jax.experimental.pallas import tpu as pltpu

# Small, forward-consistent hyperparameters (module default hidden=400 -> use 32 for test).
# NOTE: if scaled back to hidden~400 (pad to 512), set vmem_limit_bytes and consider
# pl.Buffered(1) on the constant weights (v5e/v7x scoped-VMEM limits become binding).
INPUT_DIM = 1
HIDDEN_DIM = 32
OUTPUT_DIM = 1
NUM_LAYERS = 3
OUT_PAD = 128      # lane-dense padded output width
SUBLANE = 8        # f32 sublane count -> minimum useful batch


def lstm_kernel(xproj_ref, whh0_ref, wcat_ref, bcat_ref, wlin_ref, blin_ref, out_ref):
    """Single invocation; full sequence processed with an unrolled in-kernel time loop.

    xproj_ref: (T, B, 4H)      precomputed x_t @ W_ih0.T + (b_ih0 + b_hh0)
    whh0_ref:  (H, 4H)         layer-0 hidden-hidden weight (transposed)
    wcat_ref:  (L-1, 2H, 4H)   layers 1..L-1 stacked [W_ih.T ; W_hh.T]
    bcat_ref:  (L-1, 1, 4H)    layers 1..L-1 combined bias b_ih + b_hh
    wlin_ref:  (H, OUT_PAD)    final linear weight (transposed, zero-padded to 128 lanes)
    blin_ref:  (1, OUT_PAD)    final linear bias (zero-padded)
    out_ref:   (B, OUT_PAD)    lane-dense output slab (col 0 is the real output)
    """
    T, B, H4 = xproj_ref.shape
    H = H4 // 4

    # Static lane mask selecting the g-gate lanes (PyTorch gate order: i, f, g, o).
    lane = lax.broadcasted_iota(jnp.int32, (B, H4), dimension=1)
    g_mask = (lane >= 2 * H) & (lane < 3 * H)

    def cell_update(gates, c_prev):
        # Full-width transcendentals (EUP slot), then static lane slices for the update.
        act = jnp.where(g_mask, jnp.tanh(gates), jax.nn.sigmoid(gates))
        i_g = act[:, 0 * H:1 * H]
        f_g = act[:, 1 * H:2 * H]
        g_g = act[:, 2 * H:3 * H]
        o_g = act[:, 3 * H:4 * H]
        c_new = f_g * c_prev + i_g * g_g
        h_new = o_g * jnp.tanh(c_new)
        return h_new, c_new

    def step(t, carry):
        hs, cs = carry  # tuples of (B, H) per layer
        # Layer 0: input projection already folded into xproj (bias included).
        gates0 = xproj_ref[t] + jnp.dot(hs[0], whh0_ref[...],
                                        preferred_element_type=jnp.float32)
        h0, c0 = cell_update(gates0, cs[0])
        new_h = [h0]
        new_c = [c0]
        layer_in = h0
        for l in range(1, NUM_LAYERS):  # static unroll over layers
            cat = jnp.concatenate([layer_in, hs[l]], axis=1)            # (B, 2H)
            gates = (jnp.dot(cat, wcat_ref[l - 1],
                             preferred_element_type=jnp.float32)
                     + bcat_ref[l - 1])                                 # (B, 4H)
            h_l, c_l = cell_update(gates, cs[l])
            new_h.append(h_l)
            new_c.append(c_l)
            layer_in = h_l
        return tuple(new_h), tuple(new_c)

    zeros = jnp.zeros((B, H), jnp.float32)
    init = (tuple(zeros for _ in range(NUM_LAYERS)),
            tuple(zeros for _ in range(NUM_LAYERS)))
    hs, _ = lax.fori_loop(0, T, step, init, unroll=True)

    # linear(lstm_out[:, -1, :]) -> lane-dense padded store.
    out_ref[...] = (jnp.dot(hs[-1], wlin_ref[...],
                            preferred_element_type=jnp.float32)
                    + blin_ref[...])


def lstm_model_forward(x, kp):
    """x: (B, T, INPUT_DIM) float32, batch-first (PyTorch nn.LSTM(batch_first=True))."""
    B, T, _ = x.shape
    H = HIDDEN_DIM
    B_pad = max(SUBLANE, ((B + SUBLANE - 1) // SUBLANE) * SUBLANE)

    # Hoisted layer-0 input projection (+ fused layer-0 bias), time-major, batch padded to 8.
    xproj = jnp.einsum('btd,dg->btg', x, kp["wih0"]) + kp["b0"]     # (B, T, 4H)
    xproj = jnp.transpose(xproj, (1, 0, 2))                          # (T, B, 4H)
    xproj = jnp.zeros((T, B_pad, 4 * H), jnp.float32).at[:, :B, :].set(xproj)

    vmem_spec = pl.BlockSpec(memory_space=pltpu.MemorySpace.VMEM)
    out = pl.pallas_call(
        lstm_kernel,
        out_shape=jax.ShapeDtypeStruct((B_pad, OUT_PAD), jnp.float32),
        in_specs=[vmem_spec] * 6,
        out_specs=vmem_spec,
    )(xproj, kp["whh0"], kp["wcat"], kp["bcat"], kp["wlin"], kp["blin"])

    return out[:B, :OUTPUT_DIM]


def init_raw_params(key):
    """PyTorch-shaped parameters, deterministic uniform(-1/sqrt(H), 1/sqrt(H)) init."""
    bound = 1.0 / np.sqrt(HIDDEN_DIM)
    layers = []
    for l in range(NUM_LAYERS):
        in_size = INPUT_DIM if l == 0 else HIDDEN_DIM
        key, k1, k2, k3, k4 = jax.random.split(key, 5)
        w_ih = jax.random.uniform(k1, (4 * HIDDEN_DIM, in_size), jnp.float32, -bound, bound)
        w_hh = jax.random.uniform(k2, (4 * HIDDEN_DIM, HIDDEN_DIM), jnp.float32, -bound, bound)
        b_ih = jax.random.uniform(k3, (4 * HIDDEN_DIM,), jnp.float32, -bound, bound)
        b_hh = jax.random.uniform(k4, (4 * HIDDEN_DIM,), jnp.float32, -bound, bound)
        layers.append((w_ih, w_hh, b_ih, b_hh))
    key, k5, k6 = jax.random.split(key, 3)
    lin_bound = 1.0 / np.sqrt(HIDDEN_DIM)
    w_lin = jax.random.uniform(k5, (OUTPUT_DIM, HIDDEN_DIM), jnp.float32, -lin_bound, lin_bound)
    b_lin = jax.random.uniform(k6, (OUTPUT_DIM,), jnp.float32, -lin_bound, lin_bound)
    return {"layers": layers, "w_lin": w_lin, "b_lin": b_lin}


def pack_kernel_params(raw):
    """Transpose / fuse / pad PyTorch-shaped params into the kernel layout."""
    H = HIDDEN_DIM
    w_ih0, w_hh0, b_ih0, b_hh0 = raw["layers"][0]
    wih0 = w_ih0.T                                   # (D_in, 4H) — used in wrapper only
    b0 = (b_ih0 + b_hh0)[None, :]                    # (1, 4H)    — fused into xproj
    whh0 = w_hh0.T                                   # (H, 4H)

    wcat_list, bcat_list = [], []
    for w_ih, w_hh, b_ih, b_hh in raw["layers"][1:]:
        wcat_list.append(jnp.concatenate([w_ih.T, w_hh.T], axis=0))   # (2H, 4H)
        bcat_list.append((b_ih + b_hh)[None, :])                      # (1, 4H)

    wlin = jnp.zeros((H, OUT_PAD), jnp.float32).at[:, :OUTPUT_DIM].set(raw["w_lin"].T)
    blin = jnp.zeros((1, OUT_PAD), jnp.float32).at[:, :OUTPUT_DIM].set(raw["b_lin"][None, :])
    return {
        "wih0": wih0,
        "b0": b0,
        "whh0": whh0,
        "wcat": jnp.stack(wcat_list),   # (L-1, 2H, 4H)
        "bcat": jnp.stack(bcat_list),   # (L-1, 1, 4H)
        "wlin": wlin,                   # (H, OUT_PAD)
        "blin": blin,                   # (1, OUT_PAD)
    }


def reference_forward(x, raw):
    """Pure-JAX reference replicating PyTorch nn.LSTM(batch_first=True) + Linear."""
    B, T, _ = x.shape
    H = HIDDEN_DIM
    h = [jnp.zeros((B, H), jnp.float32) for _ in range(NUM_LAYERS)]
    c = [jnp.zeros((B, H), jnp.float32) for _ in range(NUM_LAYERS)]
    for t in range(T):
        inp = x[:, t, :]
        for l, (w_ih, w_hh, b_ih, b_hh) in enumerate(raw["layers"]):
            gates = inp @ w_ih.T + b_ih + h[l] @ w_hh.T + b_hh
            i_g = jax.nn.sigmoid(gates[:, 0 * H:1 * H])
            f_g = jax.nn.sigmoid(gates[:, 1 * H:2 * H])
            g_g = jnp.tanh(gates[:, 2 * H:3 * H])
            o_g = jax.nn.sigmoid(gates[:, 3 * H:4 * H])
            c[l] = f_g * c[l] + i_g * g_g
            h[l] = o_g * jnp.tanh(c[l])
            inp = h[l]
    return h[-1] @ raw["w_lin"].T + raw["b_lin"]


if __name__ == "__main__":
    B, T = 2, 8
    key = jax.random.PRNGKey(0)
    key_x, key_p = jax.random.split(key)
    x = jax.random.normal(key_x, (B, T, INPUT_DIM), jnp.float32)

    raw_params = init_raw_params(key_p)
    kernel_params = pack_kernel_params(raw_params)

    out = lstm_model_forward(x, kernel_params)
    out = jax.block_until_ready(out)

    ref = reference_forward(x, raw_params)
    np.testing.assert_allclose(np.asarray(out), np.asarray(ref), rtol=2e-3, atol=2e-3)

    # TODO(synk): l2_reg() is a training-time regularizer over parameters, not part of forward.
    print("KERNEL_OK")
</pallas_src>

<mosaic_0001>
module attributes {stable_mosaic.version = 11 : i64} {
  func.func @lstm_kernel(%arg0: memref<8x8x128xf32, #tpu.memory_space<vmem>>, %arg1: memref<32x128xf32, #tpu.memory_space<vmem>>, %arg2: memref<2x64x128xf32, #tpu.memory_space<vmem>>, %arg3: memref<2x1x128xf32, #tpu.memory_space<vmem>>, %arg4: memref<32x128xf32, #tpu.memory_space<vmem>>, %arg5: memref<1x128xf32, #tpu.memory_space<vmem>>, %arg6: memref<8x128xf32, #tpu.memory_space<vmem>>) attributes {dimension_semantics = [], scalar_prefetch = 0 : i64, scratch_operands = 0 : i64, tpu.core_type = #tpu.core_type<tc>} {
    %0 = tpu.iota {dimensions = array<i32: 1>} : vector<8x128xi32>
    %c64_i32 = arith.constant 64 : i32
    %1 = vector.broadcast %c64_i32 : i32 to vector<8x128xi32>
    %2 = arith.cmpi sge, %0, %1 : vector<8x128xi32>
    %c96_i32 = arith.constant 96 : i32
    %3 = vector.broadcast %c96_i32 : i32 to vector<8x128xi32>
    %4 = arith.cmpi slt, %0, %3 : vector<8x128xi32>
    %5 = arith.andi %2, %4 : vector<8x128xi1>
    %cst = arith.constant 0.000000e+00 : f32
    %6 = vector.broadcast %cst : f32 to vector<8x32xf32>
    %c0_i32 = arith.constant 0 : i32
    %7 = arith.index_cast %c0_i32 : i32 to index
    %c0 = arith.constant 0 : index
    %c0_0 = arith.constant 0 : index
    %8 = vector.load %arg0[%7, %c0, %c0_0] : memref<8x8x128xf32, #tpu.memory_space<vmem>>, vector<1x8x128xf32>
    %9 = vector.shape_cast %8 : vector<1x8x128xf32> to vector<8x128xf32>
    %c0_1 = arith.constant 0 : index
    %c0_2 = arith.constant 0 : index
    %10 = vector.load %arg1[%c0_1, %c0_2] : memref<32x128xf32, #tpu.memory_space<vmem>>, vector<32x128xf32>
    %cst_3 = arith.constant dense<0.000000e+00> : vector<8x128xf32>
    %11 = tpu.matmul %6, %10, %cst_3 {dimension_numbers = #tpu.dot_dimension_numbers<[1], [0], [0], [1], [0, 0, 1, 1], [], []>} : vector<8x32xf32>, vector<32x128xf32>, vector<8x128xf32> -> vector<8x128xf32>
    %12 = arith.addf %9, %11 : vector<8x128xf32>
    %13 = math.tanh %12 : vector<8x128xf32>
    %14 = arith.negf %12 : vector<8x128xf32>
    %15 = math.exp %14 : vector<8x128xf32>
    %cst_4 = arith.constant 1.000000e+00 : f32
    %16 = vector.broadcast %cst_4 : f32 to vector<8x128xf32>
    %17 = arith.addf %16, %15 : vector<8x128xf32>
    %18 = arith.divf %16, %17 : vector<8x128xf32>
    %19 = arith.select %5, %13, %18 : vector<8x128xi1>, vector<8x128xf32>
    %20 = vector.extract_strided_slice %19 {offsets = [0, 0], sizes = [8, 32], strides = [1, 1]} : vector<8x128xf32> to vector<8x32xf32>
    %21 = vector.extract_strided_slice %19 {offsets = [0, 32], sizes = [8, 32], strides = [1, 1]} : vector<8x128xf32> to vector<8x32xf32>
    %22 = vector.extract_strided_slice %19 {offsets = [0, 64], sizes = [8, 32], strides = [1, 1]} : vector<8x128xf32> to vector<8x32xf32>
    %23 = vector.extract_strided_slice %19 {offsets = [0, 96], sizes = [8, 32], strides = [1, 1]} : vector<8x128xf32> to vector<8x32xf32>
    %24 = arith.mulf %21, %6 : vector<8x32xf32>
    %25 = arith.mulf %20, %22 : vector<8x32xf32>
    %26 = arith.addf %24, %25 : vector<8x32xf32>
    %27 = math.tanh %26 : vector<8x32xf32>
    %28 = arith.mulf %23, %27 : vector<8x32xf32>
    %29 = tpu.concatenate %28, %6 in 1 : vector<8x32xf32>, vector<8x32xf32> -> vector<8x64xf32>
    %c0_5 = arith.constant 0 : index
    %c0_6 = arith.constant 0 : index
    %c0_7 = arith.constant 0 : index
    %30 = vector.load %arg2[%c0_5, %c0_6, %c0_7] : memref<2x64x128xf32, #tpu.memory_space<vmem>>, vector<1x64x128xf32>
    %31 = vector.shape_cast %30 : vector<1x64x128xf32> to vector<64x128xf32>
    %cst_8 = arith.constant dense<0.000000e+00> : vector<8x128xf32>
    %32 = tpu.matmul %29, %31, %cst_8 {dimension_numbers = #tpu.dot_dimension_numbers<[1], [0], [0], [1], [0, 0, 1, 1], [], []>} : vector<8x64xf32>, vector<64x128xf32>, vector<8x128xf32> -> vector<8x128xf32>
    %c0_9 = arith.constant 0 : index
    %c0_10 = arith.constant 0 : index
    %c0_11 = arith.constant 0 : index
    %33 = vector.load %arg3[%c0_9, %c0_10, %c0_11] : memref<2x1x128xf32, #tpu.memory_space<vmem>>, vector<1x1x128xf32>
    %34 = vector.shape_cast %33 : vector<1x1x128xf32> to vector<1x128xf32>
    %35 = vector.broadcast %34 : vector<1x128xf32> to vector<8x128xf32>
    %36 = arith.addf %32, %35 : vector<8x128xf32>
    %37 = math.tanh %36 : vector<8x128xf32>
    %38 = arith.negf %36 : vector<8x128xf32>
    %39 = math.exp %38 : vector<8x128xf32>
    %cst_12 = arith.constant 1.000000e+00 : f32
    %40 = vector.broadcast %cst_12 : f32 to vector<8x128xf32>
    %41 = arith.addf %40, %39 : vector<8x128xf32>
    %42 = arith.divf %40, %41 : vector<8x128xf32>
    %43 = arith.select %5, %37, %42 : vector<8x128xi1>, vector<8x128xf32>
    %44 = vector.extract_strided_slice %43 {offsets = [0, 0], sizes = [8, 32], strides = [1, 1]} : vector<8x128xf32> to vector<8x32xf32>
    %45 = vector.extract_strided_slice %43 {offsets = [0, 32], sizes = [8, 32], strides = [1, 1]} : vector<8x128xf32> to vector<8x32xf32>
    %46 = vector.extract_strided_slice %43 {offsets = [0, 64], sizes = [8, 32], strides = [1, 1]} : vector<8x128xf32> to vector<8x32xf32>
    %47 = vector.extract_strided_slice %43 {offsets = [0, 96], sizes = [8, 32], strides = [1, 1]} : vector<8x128xf32> to vector<8x32xf32>
    %48 = arith.mulf %45, %6 : vector<8x32xf32>
    %49 = arith.mulf %44, %46 : vector<8x32xf32>
    %50 = arith.addf %48, %49 : vector<8x32xf32>
    %51 = math.tanh %50 : vector<8x32xf32>
    %52 = arith.mulf %47, %51 : vector<8x32xf32>
    %53 = tpu.concatenate %52, %6 in 1 : vector<8x32xf32>, vector<8x32xf32> -> vector<8x64xf32>
    %c1 = arith.constant 1 : index
    %c0_13 = arith.constant 0 : index
    %c0_14 = arith.constant 0 : index
    %54 = vector.load %arg2[%c1, %c0_13, %c0_14] : memref<2x64x128xf32, #tpu.memory_space<vmem>>, vector<1x64x128xf32>
    %55 = vector.shape_cast %54 : vector<1x64x128xf32> to vector<64x128xf32>
    %cst_15 = arith.constant dense<0.000000e+00> : vector<8x128xf32>
    %56 = tpu.matmul %53, %55, %cst_15 {dimension_numbers = #tpu.dot_dimension_numbers<[1], [0], [0], [1], [0, 0, 1, 1], [], []>} : vector<8x64xf32>, vector<64x128xf32>, vector<8x128xf32> -> vector<8x128xf32>
    %c1_16 = arith.constant 1 : index
    %c0_17 = arith.constant 0 : index
    %c0_18 = arith.constant 0 : index
    %57 = vector.load %arg3[%c1_16, %c0_17, %c0_18] : memref<2x1x128xf32, #tpu.memory_space<vmem>>, vector<1x1x128xf32>
    %58 = vector.shape_cast %57 : vector<1x1x128xf32> to vector<1x128xf32>
    %59 = vector.broadcast %58 : vector<1x128xf32> to vector<8x128xf32>
    %60 = arith.addf %56, %59 : vector<8x128xf32>
    %61 = math.tanh %60 : vector<8x128xf32>
    %62 = arith.negf %60 : vector<8x128xf32>
    %63 = math.exp %62 : vector<8x128xf32>
    %cst_19 = arith.constant 1.000000e+00 : f32
    %64 = vector.broadcast %cst_19 : f32 to vector<8x128xf32>
    %65 = arith.addf %64, %63 : vector<8x128xf32>
    %66 = arith.divf %64, %65 : vector<8x128xf32>
    %67 = arith.select %5, %61, %66 : vector<8x128xi1>, vector<8x128xf32>
    %68 = vector.extract_strided_slice %67 {offsets = [0, 0], sizes = [8, 32], strides = [1, 1]} : vector<8x128xf32> to vector<8x32xf32>
    %69 = vector.extract_strided_slice %67 {offsets = [0, 32], sizes = [8, 32], strides = [1, 1]} : vector<8x128xf32> to vector<8x32xf32>
    %70 = vector.extract_strided_slice %67 {offsets = [0, 64], sizes = [8, 32], strides = [1, 1]} : vector<8x128xf32> to vector<8x32xf32>
    %71 = vector.extract_strided_slice %67 {offsets = [0, 96], sizes = [8, 32], strides = [1, 1]} : vector<8x128xf32> to vector<8x32xf32>
    %72 = arith.mulf %69, %6 : vector<8x32xf32>
    %73 = arith.mulf %68, %70 : vector<8x32xf32>
    %74 = arith.addf %72, %73 : vector<8x32xf32>
    %75 = math.tanh %74 : vector<8x32xf32>
    %76 = arith.mulf %71, %75 : vector<8x32xf32>
    %c1_i32 = arith.constant 1 : i32
    %77 = arith.index_cast %c1_i32 : i32 to index
    %c0_20 = arith.constant 0 : index
    %c0_21 = arith.constant 0 : index
    %78 = vector.load %arg0[%77, %c0_20, %c0_21] : memref<8x8x128xf32, #tpu.memory_space<vmem>>, vector<1x8x128xf32>
    %79 = vector.shape_cast %78 : vector<1x8x128xf32> to vector<8x128xf32>
    %c0_22 = arith.constant 0 : index
    %c0_23 = arith.constant 0 : index
    %80 = vector.load %arg1[%c0_22, %c0_23] : memref<32x128xf32, #tpu.memory_space<vmem>>, vector<32x128xf32>
    %cst_24 = arith.constant dense<0.000000e+00> : vector<8x128xf32>
    %81 = tpu.matmul %28, %80, %cst_24 {dimension_numbers = #tpu.dot_dimension_numbers<[1], [0], [0], [1], [0, 0, 1, 1], [], []>} : vector<8x32xf32>, vector<32x128xf32>, vector<8x128xf32> -> vector<8x128xf32>
    %82 = arith.addf %79, %81 : vector<8x128xf32>
    %83 = math.tanh %82 : vector<8x128xf32>
    %84 = arith.negf %82 : vector<8x128xf32>
    %85 = math.exp %84 : vector<8x128xf32>
    %cst_25 = arith.constant 1.000000e+00 : f32
    %86 = vector.broadcast %cst_25 : f32 to vector<8x128xf32>
    %87 = arith.addf %86, %85 : vector<8x128xf32>
    %88 = arith.divf %86, %87 : vector<8x128xf32>
    %89 = arith.select %5, %83, %88 : vector<8x128xi1>, vector<8x128xf32>
    %90 = vector.extract_strided_slice %89 {offsets = [0, 0], sizes = [8, 32], strides = [1, 1]} : vector<8x128xf32> to vector<8x32xf32>
    %91 = vector.extract_strided_slice %89 {offsets = [0, 32], sizes = [8, 32], strides = [1, 1]} : vector<8x128xf32> to vector<8x32xf32>
    %92 = vector.extract_strided_slice %89 {offsets = [0, 64], sizes = [8, 32], strides = [1, 1]} : vector<8x128xf32> to vector<8x32xf32>
    %93 = vector.extract_strided_slice %89 {offsets = [0, 96], sizes = [8, 32], strides = [1, 1]} : vector<8x128xf32> to vector<8x32xf32>
    %94 = arith.mulf %91, %26 : vector<8x32xf32>
    %95 = arith.mulf %90, %92 : vector<8x32xf32>
    %96 = arith.addf %94, %95 : vector<8x32xf32>
    %97 = math.tanh %96 : vector<8x32xf32>
    %98 = arith.mulf %93, %97 : vector<8x32xf32>
    %99 = tpu.concatenate %98, %52 in 1 : vector<8x32xf32>, vector<8x32xf32> -> vector<8x64xf32>
    %c0_26 = arith.constant 0 : index
    %c0_27 = arith.constant 0 : index
    %c0_28 = arith.constant 0 : index
    %100 = vector.load %arg2[%c0_26, %c0_27, %c0_28] : memref<2x64x128xf32, #tpu.memory_space<vmem>>, vector<1x64x128xf32>
    %101 = vector.shape_cast %100 : vector<1x64x128xf32> to vector<64x128xf32>
    %cst_29 = arith.constant dense<0.000000e+00> : vector<8x128xf32>
    %102 = tpu.matmul %99, %101, %cst_29 {dimension_numbers = #tpu.dot_dimension_numbers<[1], [0], [0], [1], [0, 0, 1, 1], [], []>} : vector<8x64xf32>, vector<64x128xf32>, vector<8x128xf32> -> vector<8x128xf32>
    %c0_30 = arith.constant 0 : index
    %c0_31 = arith.constant 0 : index
    %c0_32 = arith.constant 0 : index
    %103 = vector.load %arg3[%c0_30, %c0_31, %c0_32] : memref<2x1x128xf32, #tpu.memory_space<vmem>>, vector<1x1x128xf32>
    %104 = vector.shape_cast %103 : vector<1x1x128xf32> to vector<1x128xf32>
    %105 = vector.broadcast %104 : vector<1x128xf32> to vector<8x128xf32>
    %106 = arith.addf %102, %105 : vector<8x128xf32>
    %107 = math.tanh %106 : vector<8x128xf32>
    %108 = arith.negf %106 : vector<8x128xf32>
    %109 = math.exp %108 : vector<8x128xf32>
    %cst_33 = arith.constant 1.000000e+00 : f32
    %110 = vector.broadcast %cst_33 : f32 to vector<8x128xf32>
    %111 = arith.addf %110, %109 : vector<8x128xf32>
    %112 = arith.divf %110, %111 : vector<8x128xf32>
    %113 = arith.select %5, %107, %112 : vector<8x128xi1>, vector<8x128xf32>
    %114 = vector.extract_strided_slice %113 {offsets = [0, 0], sizes = [8, 32], strides = [1, 1]} : vector<8x128xf32> to vector<8x32xf32>
    %115 = vector.extract_strided_slice %113 {offsets = [0, 32], sizes = [8, 32], strides = [1, 1]} : vector<8x128xf32> to vector<8x32xf32>
    %116 = vector.extract_strided_slice %113 {offsets = [0, 64], sizes = [8, 32], strides = [1, 1]} : vector<8x128xf32> to vector<8x32xf32>
    %117 = vector.extract_strided_slice %113 {offsets = [0, 96], sizes = [8, 32], strides = [1, 1]} : vector<8x128xf32> to vector<8x32xf32>
    %118 = arith.mulf %115, %50 : vector<8x32xf32>
    %119 = arith.mulf %114, %116 : vector<8x32xf32>
    %120 = arith.addf %118, %119 : vector<8x32xf32>
    %121 = math.tanh %120 : vector<8x32xf32>
    %122 = arith.mulf %117, %121 : vector<8x32xf32>
    %123 = tpu.concatenate %122, %76 in 1 : vector<8x32xf32>, vector<8x32xf32> -> vector<8x64xf32>
    %c1_34 = arith.constant 1 : index
    %c0_35 = arith.constant 0 : index
    %c0_36 = arith.constant 0 : index
    %124 = vector.load %arg2[%c1_34, %c0_35, %c0_36] : memref<2x64x128xf32, #tpu.memory_space<vmem>>, vector<1x64x128xf32>
    %125 = vector.shape_cast %124 : vector<1x64x128xf32> to vector<64x128xf32>
    %cst_37 = arith.constant dense<0.000000e+00> : vector<8x128xf32>
    %126 = tpu.matmul %123, %125, %cst_37 {dimension_numbers = #tpu.dot_dimension_numbers<[1], [0], [0], [1], [0, 0, 1, 1], [], []>} : vector<8x64xf32>, vector<64x128xf32>, vector<8x128xf32> -> vector<8x128xf32>
    %c1_38 = arith.constant 1 : index
    %c0_39 = arith.constant 0 : index
    %c0_40 = arith.constant 0 : index
    %127 = vector.load %arg3[%c1_38, %c0_39, %c0_40] : memref<2x1x128xf32, #tpu.memory_space<vmem>>, vector<1x1x128xf32>
    %128 = vector.shape_cast %127 : vector<1x1x128xf32> to vector<1x128xf32>
    %129 = vector.broadcast %128 : vector<1x128xf32> to vector<8x128xf32>
    %130 = arith.addf %126, %129 : vector<8x128xf32>
    %131 = math.tanh %130 : vector<8x128xf32>
    %132 = arith.negf %130 : vector<8x128xf32>
    %133 = math.exp %132 : vector<8x128xf32>
    %cst_41 = arith.constant 1.000000e+00 : f32
    %134 = vector.broadcast %cst_41 : f32 to vector<8x128xf32>
    %135 = arith.addf %134, %133 : vector<8x128xf32>
    %136 = arith.divf %134, %135 : vector<8x128xf32>
    %137 = arith.select %5, %131, %136 : vector<8x128xi1>, vector<8x128xf32>
    %138 = vector.extract_strided_slice %137 {offsets = [0, 0], sizes = [8, 32], strides = [1, 1]} : vector<8x128xf32> to vector<8x32xf32>
    %139 = vector.extract_strided_slice %137 {offsets = [0, 32], sizes = [8, 32], strides = [1, 1]} : vector<8x128xf32> to vector<8x32xf32>
    %140 = vector.extract_strided_slice %137 {offsets = [0, 64], sizes = [8, 32], strides = [1, 1]} : vector<8x128xf32> to vector<8x32xf32>
    %141 = vector.extract_strided_slice %137 {offsets = [0, 96], sizes = [8, 32], strides = [1, 1]} : vector<8x128xf32> to vector<8x32xf32>
    %142 = arith.mulf %139, %74 : vector<8x32xf32>
    %143 = arith.mulf %138, %140 : vector<8x32xf32>
    %144 = arith.addf %142, %143 : vector<8x32xf32>
    %145 = math.tanh %144 : vector<8x32xf32>
    %146 = arith.mulf %141, %145 : vector<8x32xf32>
    %c2_i32 = arith.constant 2 : i32
    %147 = arith.index_cast %c2_i32 : i32 to index
    %c0_42 = arith.constant 0 : index
    %c0_43 = arith.constant 0 : index
    %148 = vector.load %arg0[%147, %c0_42, %c0_43] : memref<8x8x128xf32, #tpu.memory_space<vmem>>, vector<1x8x128xf32>
    %149 = vector.shape_cast %148 : vector<1x8x128xf32> to vector<8x128xf32>
    %c0_44 = arith.constant 0 : index
    %c0_45 = arith.constant 0 : index
    %150 = vector.load %arg1[%c0_44, %c0_45] : memref<32x128xf32, #tpu.memory_space<vmem>>, vector<32x128xf32>
    %cst_46 = arith.constant dense<0.000000e+00> : vector<8x128xf32>
    %151 = tpu.matmul %98, %150, %cst_46 {dimension_numbers = #tpu.dot_dimension_numbers<[1], [0], [0], [1], [0, 0, 1, 1], [], []>} : vector<8x32xf32>, vector<32x128xf32>, vector<8x128xf32> -> vector<8x128xf32>
    %152 = arith.addf %149, %151 : vector<8x128xf32>
    %153 = math.tanh %152 : vector<8x128xf32>
    %154 = arith.negf %152 : vector<8x128xf32>
    %155 = math.exp %154 : vector<8x128xf32>
    %cst_47 = arith.constant 1.000000e+00 : f32
    %156 = vector.broadcast %cst_47 : f32 to vector<8x128xf32>
    %157 = arith.addf %156, %155 : vector<8x128xf32>
    %158 = arith.divf %156, %157 : vector<8x128xf32>
    %159 = arith.select %5, %153, %158 : vector<8x128xi1>, vector<8x128xf32>
    %160 = vector.extract_strided_slice %159 {offsets = [0, 0], sizes = [8, 32], strides = [1, 1]} : vector<8x128xf32> to vector<8x32xf32>
    %161 = vector.extract_strided_slice %159 {offsets = [0, 32], sizes = [8, 32], strides = [1, 1]} : vector<8x128xf32> to vector<8x32xf32>
    %162 = vector.extract_strided_slice %159 {offsets = [0, 64], sizes = [8, 32], strides = [1, 1]} : vector<8x128xf32> to vector<8x32xf32>
    %163 = vector.extract_strided_slice %159 {offsets = [0, 96], sizes = [8, 32], strides = [1, 1]} : vector<8x128xf32> to vector<8x32xf32>
    %164 = arith.mulf %161, %96 : vector<8x32xf32>
    %165 = arith.mulf %160, %162 : vector<8x32xf32>
    %166 = arith.addf %164, %165 : vector<8x32xf32>
    %167 = math.tanh %166 : vector<8x32xf32>
    %168 = arith.mulf %163, %167 : vector<8x32xf32>
    %169 = tpu.concatenate %168, %122 in 1 : vector<8x32xf32>, vector<8x32xf32> -> vector<8x64xf32>
    %c0_48 = arith.constant 0 : index
    %c0_49 = arith.constant 0 : index
    %c0_50 = arith.constant 0 : index
    %170 = vector.load %arg2[%c0_48, %c0_49, %c0_50] : memref<2x64x128xf32, #tpu.memory_space<vmem>>, vector<1x64x128xf32>
    %171 = vector.shape_cast %170 : vector<1x64x128xf32> to vector<64x128xf32>
    %cst_51 = arith.constant dense<0.000000e+00> : vector<8x128xf32>
    %172 = tpu.matmul %169, %171, %cst_51 {dimension_numbers = #tpu.dot_dimension_numbers<[1], [0], [0], [1], [0, 0, 1, 1], [], []>} : vector<8x64xf32>, vector<64x128xf32>, vector<8x128xf32> -> vector<8x128xf32>
    %c0_52 = arith.constant 0 : index
    %c0_53 = arith.constant 0 : index
    %c0_54 = arith.constant 0 : index
    %173 = vector.load %arg3[%c0_52, %c0_53, %c0_54] : memref<2x1x128xf32, #tpu.memory_space<vmem>>, vector<1x1x128xf32>
    %174 = vector.shape_cast %173 : vector<1x1x128xf32> to vector<1x128xf32>
    %175 = vector.broadcast %174 : vector<1x128xf32> to vector<8x128xf32>
    %176 = arith.addf %172, %175 : vector<8x128xf32>
    %177 = math.tanh %176 : vector<8x128xf32>
    %178 = arith.negf %176 : vector<8x128xf32>
    %179 = math.exp %178 : vector<8x128xf32>
    %cst_55 = arith.constant 1.000000e+00 : f32
    %180 = vector.broadcast %cst_55 : f32 to vector<8x128xf32>
    %181 = arith.addf %180, %179 : vector<8x128xf32>
    %182 = arith.divf %180, %181 : vector<8x128xf32>
    %183 = arith.select %5, %177, %182 : vector<8x128xi1>, vector<8x128xf32>
    %184 = vector.extract_strided_slice %183 {offsets = [0, 0], sizes = [8, 32], strides = [1, 1]} : vector<8x128xf32> to vector<8x32xf32>
    %185 = vector.extract_strided_slice %183 {offsets = [0, 32], sizes = [8, 32], strides = [1, 1]} : vector<8x128xf32> to vector<8x32xf32>
    %186 = vector.extract_strided_slice %183 {offsets = [0, 64], sizes = [8, 32], strides = [1, 1]} : vector<8x128xf32> to vector<8x32xf32>
    %187 = vector.extract_strided_slice %183 {offsets = [0, 96], sizes = [8, 32], strides = [1, 1]} : vector<8x128xf32> to vector<8x32xf32>
    %188 = arith.mulf %185, %120 : vector<8x32xf32>
    %189 = arith.mulf %184, %186 : vector<8x32xf32>
    %190 = arith.addf %188, %189 : vector<8x32xf32>
    %191 = math.tanh %190 : vector<8x32xf32>
    %192 = arith.mulf %187, %191 : vector<8x32xf32>
    %193 = tpu.concatenate %192, %146 in 1 : vector<8x32xf32>, vector<8x32xf32> -> vector<8x64xf32>
    %c1_56 = arith.constant 1 : index
    %c0_57 = arith.constant 0 : index
    %c0_58 = arith.constant 0 : index
    %194 = vector.load %arg2[%c1_56, %c0_57, %c0_58] : memref<2x64x128xf32, #tpu.memory_space<vmem>>, vector<1x64x128xf32>
    %195 = vector.shape_cast %194 : vector<1x64x128xf32> to vector<64x128xf32>
    %cst_59 = arith.constant dense<0.000000e+00> : vector<8x128xf32>
    %196 = tpu.matmul %193, %195, %cst_59 {dimension_numbers = #tpu.dot_dimension_numbers<[1], [0], [0], [1], [0, 0, 1, 1], [], []>} : vector<8x64xf32>, vector<64x128xf32>, vector<8x128xf32> -> vector<8x128xf32>
    %c1_60 = arith.constant 1 : index
    %c0_61 = arith.constant 0 : index
    %c0_62 = arith.constant 0 : index
    %197 = vector.load %arg3[%c1_60, %c0_61, %c0_62] : memref<2x1x128xf32, #tpu.memory_space<vmem>>, vector<1x1x128xf32>
    %198 = vector.shape_cast %197 : vector<1x1x128xf32> to vector<1x128xf32>
    %199 = vector.broadcast %198 : vector<1x128xf32> to vector<8x128xf32>
    %200 = arith.addf %196, %199 : vector<8x128xf32>
    %201 = math.tanh %200 : vector<8x128xf32>
    %202 = arith.negf %200 : vector<8x128xf32>
    %203 = math.exp %202 : vector<8x128xf32>
    %cst_63 = arith.constant 1.000000e+00 : f32
    %204 = vector.broadcast %cst_63 : f32 to vector<8x128xf32>
    %205 = arith.addf %204, %203 : vector<8x128xf32>
    %206 = arith.divf %204, %205 : vector<8x128xf32>
    %207 = arith.select %5, %201, %206 : vector<8x128xi1>, vector<8x128xf32>
    %208 = vector.extract_strided_slice %207 {offsets = [0, 0], sizes = [8, 32], strides = [1, 1]} : vector<8x128xf32> to vector<8x32xf32>
    %209 = vector.extract_strided_slice %207 {offsets = [0, 32], sizes = [8, 32], strides = [1, 1]} : vector<8x128xf32> to vector<8x32xf32>
    %210 = vector.extract_strided_slice %207 {offsets = [0, 64], sizes = [8, 32], strides = [1, 1]} : vector<8x128xf32> to vector<8x32xf32>
    %211 = vector.extract_strided_slice %207 {offsets = [0, 96], sizes = [8, 32], strides = [1, 1]} : vector<8x128xf32> to vector<8x32xf32>
    %212 = arith.mulf %209, %144 : vector<8x32xf32>
    %213 = arith.mulf %208, %210 : vector<8x32xf32>
    %214 = arith.addf %212, %213 : vector<8x32xf32>
    %215 = math.tanh %214 : vector<8x32xf32>
    %216 = arith.mulf %211, %215 : vector<8x32xf32>
    %c3_i32 = arith.constant 3 : i32
    %217 = arith.index_cast %c3_i32 : i32 to index
    %c0_64 = arith.constant 0 : index
    %c0_65 = arith.constant 0 : index
    %218 = vector.load %arg0[%217, %c0_64, %c0_65] : memref<8x8x128xf32, #tpu.memory_space<vmem>>, vector<1x8x128xf32>
    %219 = vector.shape_cast %218 : vector<1x8x128xf32> to vector<8x128xf32>
    %c0_66 = arith.constant 0 : index
    %c0_67 = arith.constant 0 : index
    %220 = vector.load %arg1[%c0_66, %c0_67] : memref<32x128xf32, #tpu.memory_space<vmem>>, vector<32x128xf32>
    %cst_68 = arith.constant dense<0.000000e+00> : vector<8x128xf32>
    %221 = tpu.matmul %168, %220, %cst_68 {dimension_numbers = #tpu.dot_dimension_numbers<[1], [0], [0], [1], [0, 0, 1, 1], [], []>} : vector<8x32xf32>, vector<32x128xf32>, vector<8x128xf32> -> vector<8x128xf32>
    %222 = arith.addf %219, %221 : vector<8x128xf32>
    %223 = math.tanh %222 : vector<8x128xf32>
    %224 = arith.negf %222 : vector<8x128xf32>
    %225 = math.exp %224 : vector<8x128xf32>
    %cst_69 = arith.constant 1.000000e+00 : f32
    %226 = vector.broadcast %cst_69 : f32 to vector<8x128xf32>
    %227 = arith.addf %226, %225 : vector<8x128xf32>
    %228 = arith.divf %226, %227 : vector<8x128xf32>
    %229 = arith.select %5, %223, %228 : vector<8x128xi1>, vector<8x128xf32>
    %230 = vector.extract_strided_slice %229 {offsets = [0, 0], sizes = [8, 32], strides = [1, 1]} : vector<8x128xf32> to vector<8x32xf32>
    %231 = vector.extract_strided_slice %229 {offsets = [0, 32], sizes = [8, 32], strides = [1, 1]} : vector<8x128xf32> to vector<8x32xf32>
    %232 = vector.extract_strided_slice %229 {offsets = [0, 64], sizes = [8, 32], strides = [1, 1]} : vector<8x128xf32> to vector<8x32xf32>
    %233 = vector.extract_strided_slice %229 {offsets = [0, 96], sizes = [8, 32], strides = [1, 1]} : vector<8x128xf32> to vector<8x32xf32>
    %234 = arith.mulf %231, %166 : vector<8x32xf32>
    %235 = arith.mulf %230, %232 : vector<8x32xf32>
    %236 = arith.addf %234, %235 : vector<8x32xf32>
    %237 = math.tanh %236 : vector<8x32xf32>
    %238 = arith.mulf %233, %237 : vector<8x32xf32>
    %239 = tpu.concatenate %238, %192 in 1 : vector<8x32xf32>, vector<8x32xf32> -> vector<8x64xf32>
    %c0_70 = arith.constant 0 : index
    %c0_71 = arith.constant 0 : index
    %c0_72 = arith.constant 0 : index
    %240 = vector.load %arg2[%c0_70, %c0_71, %c0_72] : memref<2x64x128xf32, #tpu.memory_space<vmem>>, vector<1x64x128xf32>
    %241 = vector.shape_cast %240 : vector<1x64x128xf32> to vector<64x128xf32>
    %cst_73 = arith.constant dense<0.000000e+00> : vector<8x128xf32>
    %242 = tpu.matmul %239, %241, %cst_73 {dimension_numbers = #tpu.dot_dimension_numbers<[1], [0], [0], [1], [0, 0, 1, 1], [], []>} : vector<8x64xf32>, vector<64x128xf32>, vector<8x128xf32> -> vector<8x128xf32>
    %c0_74 = arith.constant 0 : index
    %c0_75 = arith.constant 0 : index
    %c0_76 = arith.constant 0 : index
    %243 = vector.load %arg3[%c0_74, %c0_75, %c0_76] : memref<2x1x128xf32, #tpu.memory_space<vmem>>, vector<1x1x128xf32>
    %244 = vector.shape_cast %243 : vector<1x1x128xf32> to vector<1x128xf32>
    %245 = vector.broadcast %244 : vector<1x128xf32> to vector<8x128xf32>
    %246 = arith.addf %242, %245 : vector<8x128xf32>
    %247 = math.tanh %246 : vector<8x128xf32>
    %248 = arith.negf %246 : vector<8x128xf32>
    %249 = math.exp %248 : vector<8x128xf32>
    %cst_77 = arith.constant 1.000000e+00 : f32
    %250 = vector.broadcast %cst_77 : f32 to vector<8x128xf32>
    %251 = arith.addf %250, %249 : vector<8x128xf32>
    %252 = arith.divf %250, %251 : vector<8x128xf32>
    %253 = arith.select %5, %247, %252 : vector<8x128xi1>, vector<8x128xf32>
    %254 = vector.extract_strided_slice %253 {offsets = [0, 0], sizes = [8, 32], strides = [1, 1]} : vector<8x128xf32> to vector<8x32xf32>
    %255 = vector.extract_strided_slice %253 {offsets = [0, 32], sizes = [8, 32], strides = [1, 1]} : vector<8x128xf32> to vector<8x32xf32>
    %256 = vector.extract_strided_slice %253 {offsets = [0, 64], sizes = [8, 32], strides = [1, 1]} : vector<8x128xf32> to vector<8x32xf32>
    %257 = vector.extract_strided_slice %253 {offsets = [0, 96], sizes = [8, 32], strides = [1, 1]} : vector<8x128xf32> to vector<8x32xf32>
    %258 = arith.mulf %255, %190 : vector<8x32xf32>
    %259 = arith.mulf %254, %256 : vector<8x32xf32>
    %260 = arith.addf %258, %259 : vector<8x32xf32>
    %261 = math.tanh %260 : vector<8x32xf32>
    %262 = arith.mulf %257, %261 : vector<8x32xf32>
    %263 = tpu.concatenate %262, %216 in 1 : vector<8x32xf32>, vector<8x32xf32> -> vector<8x64xf32>
    %c1_78 = arith.constant 1 : index
    %c0_79 = arith.constant 0 : index
    %c0_80 = arith.constant 0 : index
    %264 = vector.load %arg2[%c1_78, %c0_79, %c0_80] : memref<2x64x128xf32, #tpu.memory_space<vmem>>, vector<1x64x128xf32>
    %265 = vector.shape_cast %264 : vector<1x64x128xf32> to vector<64x128xf32>
    %cst_81 = arith.constant dense<0.000000e+00> : vector<8x128xf32>
    %266 = tpu.matmul %263, %265, %cst_81 {dimension_numbers = #tpu.dot_dimension_numbers<[1], [0], [0], [1], [0, 0, 1, 1], [], []>} : vector<8x64xf32>, vector<64x128xf32>, vector<8x128xf32> -> vector<8x128xf32>
    %c1_82 = arith.constant 1 : index
    %c0_83 = arith.constant 0 : index
    %c0_84 = arith.constant 0 : index
    %267 = vector.load %arg3[%c1_82, %c0_83, %c0_84] : memref<2x1x128xf32, #tpu.memory_space<vmem>>, vector<1x1x128xf32>
    %268 = vector.shape_cast %267 : vector<1x1x128xf32> to vector<1x128xf32>
    %269 = vector.broadcast %268 : vector<1x128xf32> to vector<8x128xf32>
    %270 = arith.addf %266, %269 : vector<8x128xf32>
    %271 = math.tanh %270 : vector<8x128xf32>
    %272 = arith.negf %270 : vector<8x128xf32>
    %273 = math.exp %272 : vector<8x128xf32>
    %cst_85 = arith.constant 1.000000e+00 : f32
    %274 = vector.broadcast %cst_85 : f32 to vector<8x128xf32>
    %275 = arith.addf %274, %273 : vector<8x128xf32>
    %276 = arith.divf %274, %275 : vector<8x128xf32>
    %277 = arith.select %5, %271, %276 : vector<8x128xi1>, vector<8x128xf32>
    %278 = vector.extract_strided_slice %277 {offsets = [0, 0], sizes = [8, 32], strides = [1, 1]} : vector<8x128xf32> to vector<8x32xf32>
    %279 = vector.extract_strided_slice %277 {offsets = [0, 32], sizes = [8, 32], strides = [1, 1]} : vector<8x128xf32> to vector<8x32xf32>
    %280 = vector.extract_strided_slice %277 {offsets = [0, 64], sizes = [8, 32], strides = [1, 1]} : vector<8x128xf32> to vector<8x32xf32>
    %281 = vector.extract_strided_slice %277 {offsets = [0, 96], sizes = [8, 32], strides = [1, 1]} : vector<8x128xf32> to vector<8x32xf32>
    %282 = arith.mulf %279, %214 : vector<8x32xf32>
    %283 = arith.mulf %278, %280 : vector<8x32xf32>
    %284 = arith.addf %282, %283 : vector<8x32xf32>
    %285 = math.tanh %284 : vector<8x32xf32>
    %286 = arith.mulf %281, %285 : vector<8x32xf32>
    %c4_i32 = arith.constant 4 : i32
    %287 = arith.index_cast %c4_i32 : i32 to index
    %c0_86 = arith.constant 0 : index
    %c0_87 = arith.constant 0 : index
    %288 = vector.load %arg0[%287, %c0_86, %c0_87] : memref<8x8x128xf32, #tpu.memory_space<vmem>>, vector<1x8x128xf32>
    %289 = vector.shape_cast %288 : vector<1x8x128xf32> to vector<8x128xf32>
    %c0_88 = arith.constant 0 : index
    %c0_89 = arith.constant 0 : index
    %290 = vector.load %arg1[%c0_88, %c0_89] : memref<32x128xf32, #tpu.memory_space<vmem>>, vector<32x128xf32>
    %cst_90 = arith.constant dense<0.000000e+00> : vector<8x128xf32>
    %291 = tpu.matmul %238, %290, %cst_90 {dimension_numbers = #tpu.dot_dimension_numbers<[1], [0], [0], [1], [0, 0, 1, 1], [], []>} : vector<8x32xf32>, vector<32x128xf32>, vector<8x128xf32> -> vector<8x128xf32>
    %292 = arith.addf %289, %291 : vector<8x128xf32>
    %293 = math.tanh %292 : vector<8x128xf32>
    %294 = arith.negf %292 : vector<8x128xf32>
    %295 = math.exp %294 : vector<8x128xf32>
    %cst_91 = arith.constant 1.000000e+00 : f32
    %296 = vector.broadcast %cst_91 : f32 to vector<8x128xf32>
    %297 = arith.addf %296, %295 : vector<8x128xf32>
    %298 = arith.divf %296, %297 : vector<8x128xf32>
    %299 = arith.select %5, %293, %298 : vector<8x128xi1>, vector<8x128xf32>
    %300 = vector.extract_strided_slice %299 {offsets = [0, 0], sizes = [8, 32], strides = [1, 1]} : vector<8x128xf32> to vector<8x32xf32>
    %301 = vector.extract_strided_slice %299 {offsets = [0, 32], sizes = [8, 32], strides = [1, 1]} : vector<8x128xf32> to vector<8x32xf32>
    %302 = vector.extract_strided_slice %299 {offsets = [0, 64], sizes = [8, 32], strides = [1, 1]} : vector<8x128xf32> to vector<8x32xf32>
    %303 = vector.extract_strided_slice %299 {offsets = [0, 96], sizes = [8, 32], strides = [1, 1]} : vector<8x128xf32> to vector<8x32xf32>
    %304 = arith.mulf %301, %236 : vector<8x32xf32>
    %305 = arith.mulf %300, %302 : vector<8x32xf32>
    %306 = arith.addf %304, %305 : vector<8x32xf32>
    %307 = math.tanh %306 : vector<8x32xf32>
    %308 = arith.mulf %303, %307 : vector<8x32xf32>
    %309 = tpu.concatenate %308, %262 in 1 : vector<8x32xf32>, vector<8x32xf32> -> vector<8x64xf32>
    %c0_92 = arith.constant 0 : index
    %c0_93 = arith.constant 0 : index
    %c0_94 = arith.constant 0 : index
    %310 = vector.load %arg2[%c0_92, %c0_93, %c0_94] : memref<2x64x128xf32, #tpu.memory_space<vmem>>, vector<1x64x128xf32>
    %311 = vector.shape_cast %310 : vector<1x64x128xf32> to vector<64x128xf32>
    %cst_95 = arith.constant dense<0.000000e+00> : vector<8x128xf32>
    %312 = tpu.matmul %309, %311, %cst_95 {dimension_numbers = #tpu.dot_dimension_numbers<[1], [0], [0], [1], [0, 0, 1, 1], [], []>} : vector<8x64xf32>, vector<64x128xf32>, vector<8x128xf32> -> vector<8x128xf32>
    %c0_96 = arith.constant 0 : index
    %c0_97 = arith.constant 0 : index
    %c0_98 = arith.constant 0 : index
    %313 = vector.load %arg3[%c0_96, %c0_97, %c0_98] : memref<2x1x128xf32, #tpu.memory_space<vmem>>, vector<1x1x128xf32>
    %314 = vector.shape_cast %313 : vector<1x1x128xf32> to vector<1x128xf32>
    %315 = vector.broadcast %314 : vector<1x128xf32> to vector<8x128xf32>
    %316 = arith.addf %312, %315 : vector<8x128xf32>
    %317 = math.tanh %316 : vector<8x128xf32>
    %318 = arith.negf %316 : vector<8x128xf32>
    %319 = math.exp %318 : vector<8x128xf32>
    %cst_99 = arith.constant 1.000000e+00 : f32
    %320 = vector.broadcast %cst_99 : f32 to vector<8x128xf32>
    %321 = arith.addf %320, %319 : vector<8x128xf32>
    %322 = arith.divf %320, %321 : vector<8x128xf32>
    %323 = arith.select %5, %317, %322 : vector<8x128xi1>, vector<8x128xf32>
    %324 = vector.extract_strided_slice %323 {offsets = [0, 0], sizes = [8, 32], strides = [1, 1]} : vector<8x128xf32> to vector<8x32xf32>
    %325 = vector.extract_strided_slice %323 {offsets = [0, 32], sizes = [8, 32], strides = [1, 1]} : vector<8x128xf32> to vector<8x32xf32>
    %326 = vector.extract_strided_slice %323 {offsets = [0, 64], sizes = [8, 32], strides = [1, 1]} : vector<8x128xf32> to vector<8x32xf32>
    %327 = vector.extract_strided_slice %323 {offsets = [0, 96], sizes = [8, 32], strides = [1, 1]} : vector<8x128xf32> to vector<8x32xf32>
    %328 = arith.mulf %325, %260 : vector<8x32xf32>
    %329 = arith.mulf %324, %326 : vector<8x32xf32>
    %330 = arith.addf %328, %329 : vector<8x32xf32>
    %331 = math.tanh %330 : vector<8x32xf32>
    %332 = arith.mulf %327, %331 : vector<8x32xf32>
    %333 = tpu.concatenate %332, %286 in 1 : vector<8x32xf32>, vector<8x32xf32> -> vector<8x64xf32>
    %c1_100 = arith.constant 1 : index
    %c0_101 = arith.constant 0 : index
    %c0_102 = arith.constant 0 : index
    %334 = vector.load %arg2[%c1_100, %c0_101, %c0_102] : memref<2x64x128xf32, #tpu.memory_space<vmem>>, vector<1x64x128xf32>
    %335 = vector.shape_cast %334 : vector<1x64x128xf32> to vector<64x128xf32>
    %cst_103 = arith.constant dense<0.000000e+00> : vector<8x128xf32>
    %336 = tpu.matmul %333, %335, %cst_103 {dimension_numbers = #tpu.dot_dimension_numbers<[1], [0], [0], [1], [0, 0, 1, 1], [], []>} : vector<8x64xf32>, vector<64x128xf32>, vector<8x128xf32> -> vector<8x128xf32>
    %c1_104 = arith.constant 1 : index
    %c0_105 = arith.constant 0 : index
    %c0_106 = arith.constant 0 : index
    %337 = vector.load %arg3[%c1_104, %c0_105, %c0_106] : memref<2x1x128xf32, #tpu.memory_space<vmem>>, vector<1x1x128xf32>
    %338 = vector.shape_cast %337 : vector<1x1x128xf32> to vector<1x128xf32>
    %339 = vector.broadcast %338 : vector<1x128xf32> to vector<8x128xf32>
    %340 = arith.addf %336, %339 : vector<8x128xf32>
    %341 = math.tanh %340 : vector<8x128xf32>
    %342 = arith.negf %340 : vector<8x128xf32>
    %343 = math.exp %342 : vector<8x128xf32>
    %cst_107 = arith.constant 1.000000e+00 : f32
    %344 = vector.broadcast %cst_107 : f32 to vector<8x128xf32>
    %345 = arith.addf %344, %343 : vector<8x128xf32>
    %346 = arith.divf %344, %345 : vector<8x128xf32>
    %347 = arith.select %5, %341, %346 : vector<8x128xi1>, vector<8x128xf32>
    %348 = vector.extract_strided_slice %347 {offsets = [0, 0], sizes = [8, 32], strides = [1, 1]} : vector<8x128xf32> to vector<8x32xf32>
    %349 = vector.extract_strided_slice %347 {offsets = [0, 32], sizes = [8, 32], strides = [1, 1]} : vector<8x128xf32> to vector<8x32xf32>
    %350 = vector.extract_strided_slice %347 {offsets = [0, 64], sizes = [8, 32], strides = [1, 1]} : vector<8x128xf32> to vector<8x32xf32>
    %351 = vector.extract_strided_slice %347 {offsets = [0, 96], sizes = [8, 32], strides = [1, 1]} : vector<8x128xf32> to vector<8x32xf32>
    %352 = arith.mulf %349, %284 : vector<8x32xf32>
    %353 = arith.mulf %348, %350 : vector<8x32xf32>
    %354 = arith.addf %352, %353 : vector<8x32xf32>
    %355 = math.tanh %354 : vector<8x32xf32>
    %356 = arith.mulf %351, %355 : vector<8x32xf32>
    %c5_i32 = arith.constant 5 : i32
    %357 = arith.index_cast %c5_i32 : i32 to index
    %c0_108 = arith.constant 0 : index
    %c0_109 = arith.constant 0 : index
    %358 = vector.load %arg0[%357, %c0_108, %c0_109] : memref<8x8x128xf32, #tpu.memory_space<vmem>>, vector<1x8x128xf32>
    %359 = vector.shape_cast %358 : vector<1x8x128xf32> to vector<8x128xf32>
    %c0_110 = arith.constant 0 : index
    %c0_111 = arith.constant 0 : index
    %360 = vector.load %arg1[%c0_110, %c0_111] : memref<32x128xf32, #tpu.memory_space<vmem>>, vector<32x128xf32>
    %cst_112 = arith.constant dense<0.000000e+00> : vector<8x128xf32>
    %361 = tpu.matmul %308, %360, %cst_112 {dimension_numbers = #tpu.dot_dimension_numbers<[1], [0], [0], [1], [0, 0, 1, 1], [], []>} : vector<8x32xf32>, vector<32x128xf32>, vector<8x128xf32> -> vector<8x128xf32>
    %362 = arith.addf %359, %361 : vector<8x128xf32>
    %363 = math.tanh %362 : vector<8x128xf32>
    %364 = arith.negf %362 : vector<8x128xf32>
    %365 = math.exp %364 : vector<8x128xf32>
    %cst_113 = arith.constant 1.000000e+00 : f32
    %366 = vector.broadcast %cst_113 : f32 to vector<8x128xf32>
    %367 = arith.addf %366, %365 : vector<8x128xf32>
    %368 = arith.divf %366, %367 : vector<8x128xf32>
    %369 = arith.select %5, %363, %368 : vector<8x128xi1>, vector<8x128xf32>
    %370 = vector.extract_strided_slice %369 {offsets = [0, 0], sizes = [8, 32], strides = [1, 1]} : vector<8x128xf32> to vector<8x32xf32>
    %371 = vector.extract_strided_slice %369 {offsets = [0, 32], sizes = [8, 32], strides = [1, 1]} : vector<8x128xf32> to vector<8x32xf32>
    %372 = vector.extract_strided_slice %369 {offsets = [0, 64], sizes = [8, 32], strides = [1, 1]} : vector<8x128xf32> to vector<8x32xf32>
    %373 = vector.extract_strided_slice %369 {offsets = [0, 96], sizes = [8, 32], strides = [1, 1]} : vector<8x128xf32> to vector<8x32xf32>
    %374 = arith.mulf %371, %306 : vector<8x32xf32>
    %375 = arith.mulf %370, %372 : vector<8x32xf32>
    %376 = arith.addf %374, %375 : vector<8x32xf32>
    %377 = math.tanh %376 : vector<8x32xf32>
    %378 = arith.mulf %373, %377 : vector<8x32xf32>
    %379 = tpu.concatenate %378, %332 in 1 : vector<8x32xf32>, vector<8x32xf32> -> vector<8x64xf32>
    %c0_114 = arith.constant 0 : index
    %c0_115 = arith.constant 0 : index
    %c0_116 = arith.constant 0 : index
    %380 = vector.load %arg2[%c0_114, %c0_115, %c0_116] : memref<2x64x128xf32, #tpu.memory_space<vmem>>, vector<1x64x128xf32>
    %381 = vector.shape_cast %380 : vector<1x64x128xf32> to vector<64x128xf32>
    %cst_117 = arith.constant dense<0.000000e+00> : vector<8x128xf32>
    %382 = tpu.matmul %379, %381, %cst_117 {dimension_numbers = #tpu.dot_dimension_numbers<[1], [0], [0], [1], [0, 0, 1, 1], [], []>} : vector<8x64xf32>, vector<64x128xf32>, vector<8x128xf32> -> vector<8x128xf32>
    %c0_118 = arith.constant 0 : index
    %c0_119 = arith.constant 0 : index
    %c0_120 = arith.constant 0 : index
    %383 = vector.load %arg3[%c0_118, %c0_119, %c0_120] : memref<2x1x128xf32, #tpu.memory_space<vmem>>, vector<1x1x128xf32>
    %384 = vector.shape_cast %383 : vector<1x1x128xf32> to vector<1x128xf32>
    %385 = vector.broadcast %384 : vector<1x128xf32> to vector<8x128xf32>
    %386 = arith.addf %382, %385 : vector<8x128xf32>
    %387 = math.tanh %386 : vector<8x128xf32>
    %388 = arith.negf %386 : vector<8x128xf32>
    %389 = math.exp %388 : vector<8x128xf32>
    %cst_121 = arith.constant 1.000000e+00 : f32
    %390 = vector.broadcast %cst_121 : f32 to vector<8x128xf32>
    %391 = arith.addf %390, %389 : vector<8x128xf32>
    %392 = arith.divf %390, %391 : vector<8x128xf32>
    %393 = arith.select %5, %387, %392 : vector<8x128xi1>, vector<8x128xf32>
    %394 = vector.extract_strided_slice %393 {offsets = [0, 0], sizes = [8, 32], strides = [1, 1]} : vector<8x128xf32> to vector<8x32xf32>
    %395 = vector.extract_strided_slice %393 {offsets = [0, 32], sizes = [8, 32], strides = [1, 1]} : vector<8x128xf32> to vector<8x32xf32>
    %396 = vector.extract_strided_slice %393 {offsets = [0, 64], sizes = [8, 32], strides = [1, 1]} : vector<8x128xf32> to vector<8x32xf32>
    %397 = vector.extract_strided_slice %393 {offsets = [0, 96], sizes = [8, 32], strides = [1, 1]} : vector<8x128xf32> to vector<8x32xf32>
    %398 = arith.mulf %395, %330 : vector<8x32xf32>
    %399 = arith.mulf %394, %396 : vector<8x32xf32>
    %400 = arith.addf %398, %399 : vector<8x32xf32>
    %401 = math.tanh %400 : vector<8x32xf32>
    %402 = arith.mulf %397, %401 : vector<8x32xf32>
    %403 = tpu.concatenate %402, %356 in 1 : vector<8x32xf32>, vector<8x32xf32> -> vector<8x64xf32>
    %c1_122 = arith.constant 1 : index
    %c0_123 = arith.constant 0 : index
    %c0_124 = arith.constant 0 : index
    %404 = vector.load %arg2[%c1_122, %c0_123, %c0_124] : memref<2x64x128xf32, #tpu.memory_space<vmem>>, vector<1x64x128xf32>
    %405 = vector.shape_cast %404 : vector<1x64x128xf32> to vector<64x128xf32>
    %cst_125 = arith.constant dense<0.000000e+00> : vector<8x128xf32>
    %406 = tpu.matmul %403, %405, %cst_125 {dimension_numbers = #tpu.dot_dimension_numbers<[1], [0], [0], [1], [0, 0, 1, 1], [], []>} : vector<8x64xf32>, vector<64x128xf32>, vector<8x128xf32> -> vector<8x128xf32>
    %c1_126 = arith.constant 1 : index
    %c0_127 = arith.constant 0 : index
    %c0_128 = arith.constant 0 : index
    %407 = vector.load %arg3[%c1_126, %c0_127, %c0_128] : memref<2x1x128xf32, #tpu.memory_space<vmem>>, vector<1x1x128xf32>
    %408 = vector.shape_cast %407 : vector<1x1x128xf32> to vector<1x128xf32>
    %409 = vector.broadcast %408 : vector<1x128xf32> to vector<8x128xf32>
    %410 = arith.addf %406, %409 : vector<8x128xf32>
    %411 = math.tanh %410 : vector<8x128xf32>
    %412 = arith.negf %410 : vector<8x128xf32>
    %413 = math.exp %412 : vector<8x128xf32>
    %cst_129 = arith.constant 1.000000e+00 : f32
    %414 = vector.broadcast %cst_129 : f32 to vector<8x128xf32>
    %415 = arith.addf %414, %413 : vector<8x128xf32>
    %416 = arith.divf %414, %415 : vector<8x128xf32>
    %417 = arith.select %5, %411, %416 : vector<8x128xi1>, vector<8x128xf32>
    %418 = vector.extract_strided_slice %417 {offsets = [0, 0], sizes = [8, 32], strides = [1, 1]} : vector<8x128xf32> to vector<8x32xf32>
    %419 = vector.extract_strided_slice %417 {offsets = [0, 32], sizes = [8, 32], strides = [1, 1]} : vector<8x128xf32> to vector<8x32xf32>
    %420 = vector.extract_strided_slice %417 {offsets = [0, 64], sizes = [8, 32], strides = [1, 1]} : vector<8x128xf32> to vector<8x32xf32>
    %421 = vector.extract_strided_slice %417 {offsets = [0, 96], sizes = [8, 32], strides = [1, 1]} : vector<8x128xf32> to vector<8x32xf32>
    %422 = arith.mulf %419, %354 : vector<8x32xf32>
    %423 = arith.mulf %418, %420 : vector<8x32xf32>
    %424 = arith.addf %422, %423 : vector<8x32xf32>
    %425 = math.tanh %424 : vector<8x32xf32>
    %426 = arith.mulf %421, %425 : vector<8x32xf32>
    %c6_i32 = arith.constant 6 : i32
    %427 = arith.index_cast %c6_i32 : i32 to index
    %c0_130 = arith.constant 0 : index
    %c0_131 = arith.constant 0 : index
    %428 = vector.load %arg0[%427, %c0_130, %c0_131] : memref<8x8x128xf32, #tpu.memory_space<vmem>>, vector<1x8x128xf32>
    %429 = vector.shape_cast %428 : vector<1x8x128xf32> to vector<8x128xf32>
    %c0_132 = arith.constant 0 : index
    %c0_133 = arith.constant 0 : index
    %430 = vector.load %arg1[%c0_132, %c0_133] : memref<32x128xf32, #tpu.memory_space<vmem>>, vector<32x128xf32>
    %cst_134 = arith.constant dense<0.000000e+00> : vector<8x128xf32>
    %431 = tpu.matmul %378, %430, %cst_134 {dimension_numbers = #tpu.dot_dimension_numbers<[1], [0], [0], [1], [0, 0, 1, 1], [], []>} : vector<8x32xf32>, vector<32x128xf32>, vector<8x128xf32> -> vector<8x128xf32>
    %432 = arith.addf %429, %431 : vector<8x128xf32>
    %433 = math.tanh %432 : vector<8x128xf32>
    %434 = arith.negf %432 : vector<8x128xf32>
    %435 = math.exp %434 : vector<8x128xf32>
    %cst_135 = arith.constant 1.000000e+00 : f32
    %436 = vector.broadcast %cst_135 : f32 to vector<8x128xf32>
    %437 = arith.addf %436, %435 : vector<8x128xf32>
    %438 = arith.divf %436, %437 : vector<8x128xf32>
    %439 = arith.select %5, %433, %438 : vector<8x128xi1>, vector<8x128xf32>
    %440 = vector.extract_strided_slice %439 {offsets = [0, 0], sizes = [8, 32], strides = [1, 1]} : vector<8x128xf32> to vector<8x32xf32>
    %441 = vector.extract_strided_slice %439 {offsets = [0, 32], sizes = [8, 32], strides = [1, 1]} : vector<8x128xf32> to vector<8x32xf32>
    %442 = vector.extract_strided_slice %439 {offsets = [0, 64], sizes = [8, 32], strides = [1, 1]} : vector<8x128xf32> to vector<8x32xf32>
    %443 = vector.extract_strided_slice %439 {offsets = [0, 96], sizes = [8, 32], strides = [1, 1]} : vector<8x128xf32> to vector<8x32xf32>
    %444 = arith.mulf %441, %376 : vector<8x32xf32>
    %445 = arith.mulf %440, %442 : vector<8x32xf32>
    %446 = arith.addf %444, %445 : vector<8x32xf32>
    %447 = math.tanh %446 : vector<8x32xf32>
    %448 = arith.mulf %443, %447 : vector<8x32xf32>
    %449 = tpu.concatenate %448, %402 in 1 : vector<8x32xf32>, vector<8x32xf32> -> vector<8x64xf32>
    %c0_136 = arith.constant 0 : index
    %c0_137 = arith.constant 0 : index
    %c0_138 = arith.constant 0 : index
    %450 = vector.load %arg2[%c0_136, %c0_137, %c0_138] : memref<2x64x128xf32, #tpu.memory_space<vmem>>, vector<1x64x128xf32>
    %451 = vector.shape_cast %450 : vector<1x64x128xf32> to vector<64x128xf32>
    %cst_139 = arith.constant dense<0.000000e+00> : vector<8x128xf32>
    %452 = tpu.matmul %449, %451, %cst_139 {dimension_numbers = #tpu.dot_dimension_numbers<[1], [0], [0], [1], [0, 0, 1, 1], [], []>} : vector<8x64xf32>, vector<64x128xf32>, vector<8x128xf32> -> vector<8x128xf32>
    %c0_140 = arith.constant 0 : index
    %c0_141 = arith.constant 0 : index
    %c0_142 = arith.constant 0 : index
    %453 = vector.load %arg3[%c0_140, %c0_141, %c0_142] : memref<2x1x128xf32, #tpu.memory_space<vmem>>, vector<1x1x128xf32>
    %454 = vector.shape_cast %453 : vector<1x1x128xf32> to vector<1x128xf32>
    %455 = vector.broadcast %454 : vector<1x128xf32> to vector<8x128xf32>
    %456 = arith.addf %452, %455 : vector<8x128xf32>
    %457 = math.tanh %456 : vector<8x128xf32>
    %458 = arith.negf %456 : vector<8x128xf32>
    %459 = math.exp %458 : vector<8x128xf32>
    %cst_143 = arith.constant 1.000000e+00 : f32
    %460 = vector.broadcast %cst_143 : f32 to vector<8x128xf32>
    %461 = arith.addf %460, %459 : vector<8x128xf32>
    %462 = arith.divf %460, %461 : vector<8x128xf32>
    %463 = arith.select %5, %457, %462 : vector<8x128xi1>, vector<8x128xf32>
    %464 = vector.extract_strided_slice %463 {offsets = [0, 0], sizes = [8, 32], strides = [1, 1]} : vector<8x128xf32> to vector<8x32xf32>
    %465 = vector.extract_strided_slice %463 {offsets = [0, 32], sizes = [8, 32], strides = [1, 1]} : vector<8x128xf32> to vector<8x32xf32>
    %466 = vector.extract_strided_slice %463 {offsets = [0, 64], sizes = [8, 32], strides = [1, 1]} : vector<8x128xf32> to vector<8x32xf32>
    %467 = vector.extract_strided_slice %463 {offsets = [0, 96], sizes = [8, 32], strides = [1, 1]} : vector<8x128xf32> to vector<8x32xf32>
    %468 = arith.mulf %465, %400 : vector<8x32xf32>
    %469 = arith.mulf %464, %466 : vector<8x32xf32>
    %470 = arith.addf %468, %469 : vector<8x32xf32>
    %471 = math.tanh %470 : vector<8x32xf32>
    %472 = arith.mulf %467, %471 : vector<8x32xf32>
    %473 = tpu.concatenate %472, %426 in 1 : vector<8x32xf32>, vector<8x32xf32> -> vector<8x64xf32>
    %c1_144 = arith.constant 1 : index
    %c0_145 = arith.constant 0 : index
    %c0_146 = arith.constant 0 : index
    %474 = vector.load %arg2[%c1_144, %c0_145, %c0_146] : memref<2x64x128xf32, #tpu.memory_space<vmem>>, vector<1x64x128xf32>
    %475 = vector.shape_cast %474 : vector<1x64x128xf32> to vector<64x128xf32>
    %cst_147 = arith.constant dense<0.000000e+00> : vector<8x128xf32>
    %476 = tpu.matmul %473, %475, %cst_147 {dimension_numbers = #tpu.dot_dimension_numbers<[1], [0], [0], [1], [0, 0, 1, 1], [], []>} : vector<8x64xf32>, vector<64x128xf32>, vector<8x128xf32> -> vector<8x128xf32>
    %c1_148 = arith.constant 1 : index
    %c0_149 = arith.constant 0 : index
    %c0_150 = arith.constant 0 : index
    %477 = vector.load %arg3[%c1_148, %c0_149, %c0_150] : memref<2x1x128xf32, #tpu.memory_space<vmem>>, vector<1x1x128xf32>
    %478 = vector.shape_cast %477 : vector<1x1x128xf32> to vector<1x128xf32>
    %479 = vector.broadcast %478 : vector<1x128xf32> to vector<8x128xf32>
    %480 = arith.addf %476, %479 : vector<8x128xf32>
    %481 = math.tanh %480 : vector<8x128xf32>
    %482 = arith.negf %480 : vector<8x128xf32>
    %483 = math.exp %482 : vector<8x128xf32>
    %cst_151 = arith.constant 1.000000e+00 : f32
    %484 = vector.broadcast %cst_151 : f32 to vector<8x128xf32>
    %485 = arith.addf %484, %483 : vector<8x128xf32>
    %486 = arith.divf %484, %485 : vector<8x128xf32>
    %487 = arith.select %5, %481, %486 : vector<8x128xi1>, vector<8x128xf32>
    %488 = vector.extract_strided_slice %487 {offsets = [0, 0], sizes = [8, 32], strides = [1, 1]} : vector<8x128xf32> to vector<8x32xf32>
    %489 = vector.extract_strided_slice %487 {offsets = [0, 32], sizes = [8, 32], strides = [1, 1]} : vector<8x128xf32> to vector<8x32xf32>
    %490 = vector.extract_strided_slice %487 {offsets = [0, 64], sizes = [8, 32], strides = [1, 1]} : vector<8x128xf32> to vector<8x32xf32>
    %491 = vector.extract_strided_slice %487 {offsets = [0, 96], sizes = [8, 32], strides = [1, 1]} : vector<8x128xf32> to vector<8x32xf32>
    %492 = arith.mulf %489, %424 : vector<8x32xf32>
    %493 = arith.mulf %488, %490 : vector<8x32xf32>
    %494 = arith.addf %492, %493 : vector<8x32xf32>
    %495 = math.tanh %494 : vector<8x32xf32>
    %496 = arith.mulf %491, %495 : vector<8x32xf32>
    %c7_i32 = arith.constant 7 : i32
    %497 = arith.index_cast %c7_i32 : i32 to index
    %c0_152 = arith.constant 0 : index
    %c0_153 = arith.constant 0 : index
    %498 = vector.load %arg0[%497, %c0_152, %c0_153] : memref<8x8x128xf32, #tpu.memory_space<vmem>>, vector<1x8x128xf32>
    %499 = vector.shape_cast %498 : vector<1x8x128xf32> to vector<8x128xf32>
    %c0_154 = arith.constant 0 : index
    %c0_155 = arith.constant 0 : index
    %500 = vector.load %arg1[%c0_154, %c0_155] : memref<32x128xf32, #tpu.memory_space<vmem>>, vector<32x128xf32>
    %cst_156 = arith.constant dense<0.000000e+00> : vector<8x128xf32>
    %501 = tpu.matmul %448, %500, %cst_156 {dimension_numbers = #tpu.dot_dimension_numbers<[1], [0], [0], [1], [0, 0, 1, 1], [], []>} : vector<8x32xf32>, vector<32x128xf32>, vector<8x128xf32> -> vector<8x128xf32>
    %502 = arith.addf %499, %501 : vector<8x128xf32>
    %503 = math.tanh %502 : vector<8x128xf32>
    %504 = arith.negf %502 : vector<8x128xf32>
    %505 = math.exp %504 : vector<8x128xf32>
    %cst_157 = arith.constant 1.000000e+00 : f32
    %506 = vector.broadcast %cst_157 : f32 to vector<8x128xf32>
    %507 = arith.addf %506, %505 : vector<8x128xf32>
    %508 = arith.divf %506, %507 : vector<8x128xf32>
    %509 = arith.select %5, %503, %508 : vector<8x128xi1>, vector<8x128xf32>
    %510 = vector.extract_strided_slice %509 {offsets = [0, 0], sizes = [8, 32], strides = [1, 1]} : vector<8x128xf32> to vector<8x32xf32>
    %511 = vector.extract_strided_slice %509 {offsets = [0, 32], sizes = [8, 32], strides = [1, 1]} : vector<8x128xf32> to vector<8x32xf32>
    %512 = vector.extract_strided_slice %509 {offsets = [0, 64], sizes = [8, 32], strides = [1, 1]} : vector<8x128xf32> to vector<8x32xf32>
    %513 = vector.extract_strided_slice %509 {offsets = [0, 96], sizes = [8, 32], strides = [1, 1]} : vector<8x128xf32> to vector<8x32xf32>
    %514 = arith.mulf %511, %446 : vector<8x32xf32>
    %515 = arith.mulf %510, %512 : vector<8x32xf32>
    %516 = arith.addf %514, %515 : vector<8x32xf32>
    %517 = math.tanh %516 : vector<8x32xf32>
    %518 = arith.mulf %513, %517 : vector<8x32xf32>
    %519 = tpu.concatenate %518, %472 in 1 : vector<8x32xf32>, vector<8x32xf32> -> vector<8x64xf32>
    %c0_158 = arith.constant 0 : index
    %c0_159 = arith.constant 0 : index
    %c0_160 = arith.constant 0 : index
    %520 = vector.load %arg2[%c0_158, %c0_159, %c0_160] : memref<2x64x128xf32, #tpu.memory_space<vmem>>, vector<1x64x128xf32>
    %521 = vector.shape_cast %520 : vector<1x64x128xf32> to vector<64x128xf32>
    %cst_161 = arith.constant dense<0.000000e+00> : vector<8x128xf32>
    %522 = tpu.matmul %519, %521, %cst_161 {dimension_numbers = #tpu.dot_dimension_numbers<[1], [0], [0], [1], [0, 0, 1, 1], [], []>} : vector<8x64xf32>, vector<64x128xf32>, vector<8x128xf32> -> vector<8x128xf32>
    %c0_162 = arith.constant 0 : index
    %c0_163 = arith.constant 0 : index
    %c0_164 = arith.constant 0 : index
    %523 = vector.load %arg3[%c0_162, %c0_163, %c0_164] : memref<2x1x128xf32, #tpu.memory_space<vmem>>, vector<1x1x128xf32>
    %524 = vector.shape_cast %523 : vector<1x1x128xf32> to vector<1x128xf32>
    %525 = vector.broadcast %524 : vector<1x128xf32> to vector<8x128xf32>
    %526 = arith.addf %522, %525 : vector<8x128xf32>
    %527 = math.tanh %526 : vector<8x128xf32>
    %528 = arith.negf %526 : vector<8x128xf32>
    %529 = math.exp %528 : vector<8x128xf32>
    %cst_165 = arith.constant 1.000000e+00 : f32
    %530 = vector.broadcast %cst_165 : f32 to vector<8x128xf32>
    %531 = arith.addf %530, %529 : vector<8x128xf32>
    %532 = arith.divf %530, %531 : vector<8x128xf32>
    %533 = arith.select %5, %527, %532 : vector<8x128xi1>, vector<8x128xf32>
    %534 = vector.extract_strided_slice %533 {offsets = [0, 0], sizes = [8, 32], strides = [1, 1]} : vector<8x128xf32> to vector<8x32xf32>
    %535 = vector.extract_strided_slice %533 {offsets = [0, 32], sizes = [8, 32], strides = [1, 1]} : vector<8x128xf32> to vector<8x32xf32>
    %536 = vector.extract_strided_slice %533 {offsets = [0, 64], sizes = [8, 32], strides = [1, 1]} : vector<8x128xf32> to vector<8x32xf32>
    %537 = vector.extract_strided_slice %533 {offsets = [0, 96], sizes = [8, 32], strides = [1, 1]} : vector<8x128xf32> to vector<8x32xf32>
    %538 = arith.mulf %535, %470 : vector<8x32xf32>
    %539 = arith.mulf %534, %536 : vector<8x32xf32>
    %540 = arith.addf %538, %539 : vector<8x32xf32>
    %541 = math.tanh %540 : vector<8x32xf32>
    %542 = arith.mulf %537, %541 : vector<8x32xf32>
    %543 = tpu.concatenate %542, %496 in 1 : vector<8x32xf32>, vector<8x32xf32> -> vector<8x64xf32>
    %c1_166 = arith.constant 1 : index
    %c0_167 = arith.constant 0 : index
    %c0_168 = arith.constant 0 : index
    %544 = vector.load %arg2[%c1_166, %c0_167, %c0_168] : memref<2x64x128xf32, #tpu.memory_space<vmem>>, vector<1x64x128xf32>
    %545 = vector.shape_cast %544 : vector<1x64x128xf32> to vector<64x128xf32>
    %cst_169 = arith.constant dense<0.000000e+00> : vector<8x128xf32>
    %546 = tpu.matmul %543, %545, %cst_169 {dimension_numbers = #tpu.dot_dimension_numbers<[1], [0], [0], [1], [0, 0, 1, 1], [], []>} : vector<8x64xf32>, vector<64x128xf32>, vector<8x128xf32> -> vector<8x128xf32>
    %c1_170 = arith.constant 1 : index
    %c0_171 = arith.constant 0 : index
    %c0_172 = arith.constant 0 : index
    %547 = vector.load %arg3[%c1_170, %c0_171, %c0_172] : memref<2x1x128xf32, #tpu.memory_space<vmem>>, vector<1x1x128xf32>
    %548 = vector.shape_cast %547 : vector<1x1x128xf32> to vector<1x128xf32>
    %549 = vector.broadcast %548 : vector<1x128xf32> to vector<8x128xf32>
    %550 = arith.addf %546, %549 : vector<8x128xf32>
    %551 = math.tanh %550 : vector<8x128xf32>
    %552 = arith.negf %550 : vector<8x128xf32>
    %553 = math.exp %552 : vector<8x128xf32>
    %cst_173 = arith.constant 1.000000e+00 : f32
    %554 = vector.broadcast %cst_173 : f32 to vector<8x128xf32>
    %555 = arith.addf %554, %553 : vector<8x128xf32>
    %556 = arith.divf %554, %555 : vector<8x128xf32>
    %557 = arith.select %5, %551, %556 : vector<8x128xi1>, vector<8x128xf32>
    %558 = vector.extract_strided_slice %557 {offsets = [0, 0], sizes = [8, 32], strides = [1, 1]} : vector<8x128xf32> to vector<8x32xf32>
    %559 = vector.extract_strided_slice %557 {offsets = [0, 32], sizes = [8, 32], strides = [1, 1]} : vector<8x128xf32> to vector<8x32xf32>
    %560 = vector.extract_strided_slice %557 {offsets = [0, 64], sizes = [8, 32], strides = [1, 1]} : vector<8x128xf32> to vector<8x32xf32>
    %561 = vector.extract_strided_slice %557 {offsets = [0, 96], sizes = [8, 32], strides = [1, 1]} : vector<8x128xf32> to vector<8x32xf32>
    %562 = arith.mulf %559, %494 : vector<8x32xf32>
    %563 = arith.mulf %558, %560 : vector<8x32xf32>
    %564 = arith.addf %562, %563 : vector<8x32xf32>
    %565 = math.tanh %564 : vector<8x32xf32>
    %566 = arith.mulf %561, %565 : vector<8x32xf32>
    %c8_i32 = arith.constant 8 : i32
    %c0_174 = arith.constant 0 : index
    %c0_175 = arith.constant 0 : index
    %567 = vector.load %arg4[%c0_174, %c0_175] : memref<32x128xf32, #tpu.memory_space<vmem>>, vector<32x128xf32>
    %cst_176 = arith.constant dense<0.000000e+00> : vector<8x128xf32>
    %568 = tpu.matmul %566, %567, %cst_176 {dimension_numbers = #tpu.dot_dimension_numbers<[1], [0], [0], [1], [0, 0, 1, 1], [], []>} : vector<8x32xf32>, vector<32x128xf32>, vector<8x128xf32> -> vector<8x128xf32>
    %c0_177 = arith.constant 0 : index
    %c0_178 = arith.constant 0 : index
    %569 = vector.load %arg5[%c0_177, %c0_178] : memref<1x128xf32, #tpu.memory_space<vmem>>, vector<1x128xf32>
    %570 = vector.broadcast %569 : vector<1x128xf32> to vector<8x128xf32>
    %571 = arith.addf %568, %570 : vector<8x128xf32>
    %c0_179 = arith.constant 0 : index
    %c0_180 = arith.constant 0 : index
    %572 = vector.load %arg6[%c0_179, %c0_180] : memref<8x128xf32, #tpu.memory_space<vmem>>, vector<8x128xf32>
    tpu.vector_store %arg6[%c0_179, %c0_180], %571 {strides = array<i32>} : memref<8x128xf32, #tpu.memory_space<vmem>>, vector<8x128xf32>,
    return
  }
}

</mosaic_0001>

<bundles_post_ra>
// kernel: tpu_custom_call.1
= control target key start
LH: loop header
LB: loop body
LE: loop exit
PB: predicated region body
PF: predicated region fallthrough
CT: control target
= control target key end

     0   :  { %11 = vsyncpa [#allocation3], 0  ;;  %s4617_s0 = inlined_call_operand.hbm [shape: f32[8,8,128], index: 0, kind: input, shape index: {}]   ;;  %s4618_s1 = inlined_call_operand.hbm [shape: f32[32,128], index: 1, kind: input, shape index: {}]   ;;  %s4619_s2 = inlined_call_operand.hbm [shape: f32[2,64,128], index: 2, kind: input, shape index: {}]   ;;  %s4620_s3 = inlined_call_operand.vmem [shape: f32[2,1,128], index: 3, kind: input, shape index: {}]   ;;  %s4621_s4 = inlined_call_operand.hbm [shape: f32[32,128], index: 4, kind: input, shape index: {}]   ;;  %s4622_s5 = inlined_call_operand.vmem [shape: f32[1,128], index: 5, kind: input, shape index: {}]   ;;  %s4623_s6 = inlined_call_operand.hbm [shape: f32[8,128], index: 6, kind: output, shape index: {}]  }
   0x1   :  { %12 = vsyncpa [#allocation6], 0 }
   0x2   :  { %13 = vsyncpa [#allocation9], 0 }
   0x3   :  { %14 = vsyncpa [#allocation4], 0  ;;  %s3937_s21 = smov [#allocation5]   ;;  %s3938_s23 = smov [#allocation2]  }
   0x4   :  { %s32_s22 = sshll.u32 %s3937_s21, 4  ;;  %s20_s24 = sshll.u32 %s3938_s23, 4  ;;  %s33_s22 = int_to_ptr.vmem [resolvable:$true] %s32_s22  ;;  %s3984_s24 = int_to_ptr.vmem [resolvable:$true] %s20_s24 }
   0x5   :  { %s3819_s27 = scalar_lea.hbm %s4618_s1, 512 }
   0x6   :  { %p3820_p0 = scmp.ne.s32.totalorder %s4618_s1, %s3819_s27  ;;  %p3823_p1 = scmp.lt.u32.totalorder %s3819_s27, %s4618_s1 }
   0x8   :  { %p3825_p2 = pnand %p3823_p1, %p3820_p0 }
   0xa   :  { %3828 = shalt.err (!%p3825_p2)
}
   0xb   :  { %s3829_s8 = scalar_lea.vmem %s33_s22, 512  ;;  %p3834_p4 = scmp.lt.s32.totalorder %s33_s22, %s33_s22 }
   0xc   :  { %p3830_p3 = scmp.ne.s32.totalorder %s33_s22, %s3829_s8  ;;  %p3835_p5 = scmp.lt.s32.totalorder %s3829_s8, %s3829_s8 }
   0xe   :  { %p3836_p6 = por %p3835_p5, %p3834_p4 }
  0x10   :  { %p3837_p7 = pnand %p3836_p6, %p3830_p3 }
  0x12   :  { %3840 = shalt.err (!%p3837_p7)
}
  0x13   :  { %s3939_s9 = smov 128   ;;  %s3940_s10 = smov 8  }
  0x14   :  { %38 = dma.hbm_to_vmem [thread:$0]  %s4618_s1, 512, %s33_s22, [#allocation6], %s3939_s9, %s3939_s9, %s3940_s10  }
  0x15   :  { %s3841_s15 = scalar_lea.hbm %s4617_s0, 1024 }
  0x16   :  { %p3842_p8 = scmp.ne.s32.totalorder %s4617_s0, %s3841_s15  ;;  %p3845_p9 = scmp.lt.u32.totalorder %s3841_s15, %s4617_s0 }
  0x18   :  { %p3847_p10 = pnand %p3845_p9, %p3842_p8 }
  0x1a   :  { %3850 = shalt.err (!%p3847_p10)
}
  0x1b   :  { %s3851_s20 = scalar_lea.vmem %s3984_s24, 1024  ;;  %p3856_p12 = scmp.lt.s32.totalorder %s3984_s24, %s3984_s24 }
  0x1c   :  { %p3852_p11 = scmp.ne.s32.totalorder %s3984_s24, %s3851_s20  ;;  %p3857_p13 = scmp.lt.s32.totalorder %s3851_s20, %s3851_s20 }
  0x1e   :  { %p3858_p0 = por %p3857_p13, %p3856_p12 }
  0x20   :  { %p3859_p1 = pnand %p3858_p0, %p3852_p11 }
  0x22   :  { %3862 = shalt.err (!%p3859_p1)
}
  0x23   :  { %26 = dma.hbm_to_vmem [thread:$0]  %s4617_s0, 1024, %s3984_s24, [#allocation3], %s3939_s9, %s3939_s9, %s3940_s10  }
  0x24   :  { %s3941_s22 = smov [#allocation7]   ;;  %s3942_s25 = smov [#allocation8]  }
  0x25   :  { %s44_s23 = sshll.u32 %s3941_s22, 4  ;;  %s58_s26 = sshll.u32 %s3942_s25, 4  ;;  %s45_s23 = int_to_ptr.vmem [resolvable:$true] %s44_s23  ;;  %s4021_s26 = int_to_ptr.vmem [resolvable:$true] %s58_s26 }
  0x26   :  { %s3863_s29 = scalar_lea.hbm %s4619_s2, 2048 }
  0x27   :  { %p3864_p2 = scmp.ne.s32.totalorder %s4619_s2, %s3863_s29  ;;  %p3867_p3 = scmp.lt.u32.totalorder %s3863_s29, %s4619_s2 }
  0x29   :  { %p3869_p4 = pnand %p3867_p3, %p3864_p2 }
  0x2b   :  { %3872 = shalt.err (!%p3869_p4)
}
  0x2c   :  { %s3873_s0 = scalar_lea.vmem %s45_s23, 2048  ;;  %p3878_p6 = scmp.lt.s32.totalorder %s45_s23, %s45_s23 }
  0x2d   :  { %p3874_p5 = scmp.ne.s32.totalorder %s45_s23, %s3873_s0  ;;  %p3879_p7 = scmp.lt.s32.totalorder %s3873_s0, %s3873_s0 }
  0x2f   :  { %p3880_p8 = por %p3879_p7, %p3878_p6 }
  0x31   :  { %p3881_p9 = pnand %p3880_p8, %p3874_p5 }
  0x33   :  { %3884 = shalt.err (!%p3881_p9)
}
  0x34   :  { %50 = dma.hbm_to_vmem [thread:$0]  %s4619_s2, 2048, %s45_s23, [#allocation6], %s3939_s9, %s3939_s9, %s3940_s10  }
  0x35   :  { %s3885_s15 = scalar_lea.hbm %s4621_s4, 512 }
  0x36   :  { %p3886_p10 = scmp.ne.s32.totalorder %s4621_s4, %s3885_s15  ;;  %p3889_p11 = scmp.lt.u32.totalorder %s3885_s15, %s4621_s4 }
  0x38   :  { %p3891_p12 = pnand %p3889_p11, %p3886_p10 }
  0x3a   :  { %3894 = shalt.err (!%p3891_p12)
}
  0x3b   :  { %s3895_s20 = scalar_lea.vmem %s4021_s26, 512  ;;  %p3900_p0 = scmp.lt.s32.totalorder %s4021_s26, %s4021_s26 }
  0x3c   :  { %p3896_p13 = scmp.ne.s32.totalorder %s4021_s26, %s3895_s20  ;;  %p3901_p1 = scmp.lt.s32.totalorder %s3895_s20, %s3895_s20 }
  0x3e   :  { %p3902_p2 = por %p3901_p1, %p3900_p0 }
  0x40   :  { %p3903_p3 = pnand %p3902_p2, %p3896_p13 }
  0x42   :  { %3906 = shalt.err (!%p3903_p3)
}
  0x43   :  { %64 = dma.hbm_to_vmem [thread:$0]  %s4621_s4, 512, %s4021_s26, [#allocation9], %s3939_s9, %s3939_s9, %s3940_s10  }
  0x44   :  { %3929 = dma.done.wait [#allocation3], 1024  }
  0x45   :  { %3930 = vsyncadd [#allocation3], 4294966272 }
  0x46   :  { %3931 = dma.done.wait [#allocation6], 2560  }
  0x47   :  { %3932 = vsyncadd [#allocation6], 4294964736 }
  0x48   :  { %3933 = dma.done.wait [#allocation9], 512  }
  0x49   :  { %3934 = vsyncadd [#allocation9], 4294966784  ;;  %v3943_v0 = vmov 0.0|0.0   ;;  %vm3944_vm0 = vmmov 0   ;;  %v3945_v1 = vmov 0.0   ;;  %v85_v2 = vld [vmem:[#allocation5] sm:$0xff]  ;;  %v79_v14 = vlaneseq }
  0x4a   :  { %3367 = vmatprep.subr.bf16.mxu0 %v3943_v0  ;;  %2972 = vmatprep.mubr.msk.f32.mxu0 %vm3944_vm0, %v3945_v1  ;;  %v86_v3 = vld [vmem:[#allocation5 + $0x8] sm:$0xff]  ;;  %v87_v4 = vld [vmem:[#allocation5 + $0x10] sm:$0xff]  ;;  %v88_v6 = vld [vmem:[#allocation5 + $0x18] sm:$0xff]  ;;  %s3946_s4 = smov 64   ;;  %s3947_s9 = smov 32   ;;  %vm89_vm4 = vcmask 261120  }
  0x4b   :  { %3373 = vmatprep.subr.bf16.mxu1 %v3943_v0  ;;  %2991 = vmatprep.mubr.msk.f32.mxu1 %vm3944_vm0, %v3945_v1  ;;  %v4064_v5 = vpack.c.bf16 %v86_v3, %v85_v2  ;;  %v4067_v7 = vpack.c.bf16 %v88_v6, %v87_v4  ;;  %v84_v8 = vld [vmem:[#allocation2] sm:$0xff]  ;;  %v80_v16 = vand.u32 127, %v79_v14  ;;  %v195_v27 = vld [vmem:[#allocation7 + $0x8] sm:$0xff]  ;;  %v196_v28 = vld [vmem:[#allocation7 + $0x10] sm:$0xff]  ;;  %vm209_vm5 = vcmask 523264   ;;  %s3948_s30 = smov [#allocation10]  }
  0x4c   :  { %v194_v26 = vld [vmem:[#allocation7] sm:$0xff]  ;;  %v197_v30 = vld [vmem:[#allocation7 + $0x18] sm:$0xff]  ;;  %v199_v33 = vld [vmem:[#allocation7 + $0x28] sm:$0xff]  ;;  %s2712_s7 = sshll.u32 %s3948_s30, 4  ;;  %s2713_s7 = int_to_ptr.vmem [resolvable:$true] %s2712_s7 }
  0x4d   :  { %3369 = vmatpush3.bf16.msra.mxu0 %v4064_v5  ;;  %vm81_vm1 = vcmp.ge.s32.totalorder %v80_v16, 64  ;;  %vm82_vm2 = vcmp.lt.s32.totalorder %v80_v16, 96  ;;  %v4086_v29 = vpack.c.bf16 %v195_v27, %v194_v26  ;;  %v4089_v31 = vpack.c.bf16 %v197_v30, %v196_v28  ;;  %v198_v32 = vld [vmem:[#allocation7 + $0x20] sm:$0xff]  ;;  %v200_v35 = vld [vmem:[#allocation7 + $0x30] sm:$0xff]  ;;  %v201_v36 = vld [vmem:[#allocation7 + $0x38] sm:$0xff]  ;;  %s3907_s8 = scalar_lea.vmem %s2713_s7, 128  ;;  %p3912_p5 = scmp.lt.s32.totalorder %s2713_s7, %s2713_s7 }
  0x4e   :  { %3370 = vmatprep.subr.bf16.mxu0 %v3943_v0  ;;  %vm4075_vm3 = vmand %vm81_vm1, %vm82_vm2  ;;  %v4093_v34 = vpack.c.bf16 %v199_v33, %v198_v32  ;;  %v4098_v38 = vpack.c.bf16 %v201_v36, %v200_v35  ;;  %v4118_v43 = vld [vmem:[%s4620_s3] ss:$0 sm:$0xff]  ;;  %v429_v48 = vld [vmem:[#allocation2 + $0x8] sm:$0xff]  ;;  %p3908_p4 = scmp.ne.s32.totalorder %s2713_s7, %s3907_s8  ;;  %p3913_p6 = scmp.lt.s32.totalorder %s3907_s8, %s3907_s8 }
  0x4f   :  { %3375 = vmatpush3.bf16.msra.mxu1 %v4086_v29  ;;  %v315_v14 = vld [vmem:[#allocation7 + $0x48] sm:$0xff] }
  0x50   :  { %3376 = vmatprep.subr.bf16.mxu1 %v3943_v0  ;;  %p3914_p7 = por %p3913_p6, %p3912_p5 }
  0x51   :  { %3372 = vmatpush3.bf16.msra.mxu0 %v4067_v7 }
  0x52   :  { %3385 = vmatprep.subr.bf16.mxu0 %v3943_v0  ;;  %p3915_p8 = pnand %p3914_p7, %p3908_p4 }
  0x53   :  { %3378 = vmatpush3.bf16.msra.mxu1 %v4089_v31 }
  0x54   :  { %2973 = vmatmul.mubr.f32.vlgmr.msra.gmra.mrb[0].mxu0 %v3945_v1  ;;  %3379 = vmatprep.subr.bf16.mxu1 %v3943_v0 }
  0x55   :  { %3010 = vmatprep.mubr.msk.f32.mxu0 %vm3944_vm0, %v3945_v1 }
  0x57   :  { %3381 = vmatpush3.bf16.msra.mxu1 %v4093_v34 }
  0x58   :  { %3382 = vmatprep.subr.bf16.mxu1 %v3943_v0 }
  0x5b   :  { %3384 = vmatpush3.bf16.msra.mxu1 %v4098_v38 }
  0x5c   :  { %3397 = vmatprep.subr.bf16.mxu1 %v3943_v0 }
 0x127   :  { %v159_v9 = vpop.f32.mrb[0].mxu0 }
 0x128   :  { %v163_v10 = vadd.f32 %v159_v9, %v84_v8  ;;  %v2974_v11 = vpop.f32.mrb[1].mxu0 }
 0x12a   :  { %v2723_v12 = vmul.f32 -1.442695, %v163_v10 }
 0x12c   :  { %3625 = vpow2.f32 %v2723_v12 }
 0x12d   :  { %3627 = vtanh.f32 %v163_v10 }
 0x136   :  { %v3626_v13 = vpop.eup %3625 }
 0x137   :  { %v168_v15 = vadd.f32 1.0, %v3626_v13  ;;  %v3628_v18 = vpop.eup %3627  ;;  %v314_v13 = vld [vmem:[#allocation7 + $0x40] sm:$0xff] }
 0x138   :  { %v4136_v16 = vpack.c.bf16 %v315_v14, %v314_v13 }
 0x139   :  { %3629 = vrcp.f32 %v168_v15  ;;  %v316_v15 = vld [vmem:[#allocation7 + $0x50] sm:$0xff] }
 0x13a   :  { %3387 = vmatpush3.bf16.msra.mxu0 %v4136_v16 }
 0x13b   :  { %3388 = vmatprep.subr.bf16.mxu0 %v3943_v0 }
 0x143   :  { %v3630_v19 = vpop.eup %3629 }
 0x144   :  { %v171_v20 = vsel %vm4075_vm3, %v3628_v18, %v3630_v19  ;;  %v317_v18 = vld [vmem:[#allocation7 + $0x58] sm:$0xff] }
 0x145   :  { %174 = vrot.lane.b32.xlu0 %v171_v20, %s3946_s4  ;;  %v172_v23 = vmul.f32 0.0, %v171_v20 }
 0x1b7   :  { %v175_v21 = vpop.permute.xlu0 %174 }
 0x1b8   :  { %v177_v22 = vmul.f32 %v175_v21, %v171_v20  ;;  %v318_v21 = vld [vmem:[#allocation7 + $0x60] sm:$0xff] }
 0x1ba   :  { %179 = vrot.lane.b32.xlu0 %v177_v22, %s3947_s9  ;;  %v319_v22 = vld [vmem:[#allocation7 + $0x68] sm:$0xff] }
 0x22c   :  { %v180_v24 = vpop.permute.xlu0 %179 }
 0x22d   :  { %v4083_v25 = vadd.f32 %v180_v24, %v172_v23  ;;  %v4146_v23 = vpack.c.bf16 %v319_v22, %v318_v21  ;;  %v320_v24 = vld [vmem:[#allocation7 + $0x70] sm:$0xff] }
 0x22f   :  { %3631 = vtanh.f32 %v4083_v25 }
 0x239   :  { %v3632_v37 = vpop.eup %3631 }
 0x23a   :  { %185 = vrot.lane.b32.xlu1 %v3632_v37, %s3946_s4 }
 0x2ac   :  { %v186_v39 = vpop.permute.xlu1 %185 }
 0x2ad   :  { %v188_v40 = vmul.f32 %v186_v39, %v171_v20  ;;  %v4140_v20 = vpack.c.bf16 %v317_v18, %v316_v15 }
 0x2af   :  { %190 = vrot.lane.b32.xlu1 %v188_v40, %s3947_s9  ;;  %3390 = vmatpush3.bf16.msra.mxu0 %v4140_v20 }
 0x2b0   :  { %3391 = vmatprep.subr.bf16.mxu0 %v3943_v0 }
 0x2b3   :  { %3393 = vmatpush3.bf16.msra.mxu0 %v4146_v23 }
 0x2b4   :  { %3394 = vmatprep.subr.bf16.mxu0 %v3943_v0 }
 0x321   :  { %v191_v41 = vpop.permute.xlu1 %190 }
 0x322   :  { %v193_v42 = vsel %vm89_vm4, %v191_v41, 0.0 }
 0x323   :  { %2992 = vmatmul.mubr.msk.f32.vlgmr.msra.gmra.mrb[0].mxu1 %vm209_vm5, %v193_v42 }
 0x324   :  { %3399 = vmatpush3.bf16.msra.mxu1 %v4064_v5  ;;  %3021 = vmatprep.mubr.msk.f32.mxu1 %vm3944_vm0, %v3945_v1 }
 0x325   :  { %3400 = vmatprep.subr.bf16.mxu1 %v3943_v0 }
 0x328   :  { %3402 = vmatpush3.bf16.msra.mxu1 %v4067_v7 }
 0x329   :  { %3415 = vmatprep.subr.bf16.mxu1 %v3943_v0 }
 0x32b   :  { %3022 = vmatmul.mubr.msk.f32.vlgmr.msra.gmra.mrb[2].mxu1 %vm89_vm4, %v191_v41  ;;  %v4199_v41 = vld [vmem:[%s4620_s3 + $0x1] ss:$0 sm:$0xff] }
 0x32c   :  { %3059 = vmatprep.mubr.msk.f32.mxu1 %vm3944_vm0, %v3945_v1  ;;  %3417 = vmatpush3.bf16.msra.mxu1 %v4136_v16 }
 0x32d   :  { %3418 = vmatprep.subr.bf16.mxu1 %v3943_v0 }
 0x330   :  { %3420 = vmatpush3.bf16.msra.mxu1 %v4140_v20 }
 0x331   :  { %3421 = vmatprep.subr.bf16.mxu1 %v3943_v0 }
 0x334   :  { %3423 = vmatpush3.bf16.msra.mxu1 %v4146_v23 }
 0x335   :  { %3424 = vmatprep.subr.bf16.mxu1 %v3943_v0 }
 0x3f6   :  { %v279_v44 = vpop.f32.mrb[0].mxu1 }
 0x3f7   :  { %v280_v45 = vadd.f32 %v4118_v43, %v279_v44  ;;  %v2993_v46 = vpop.f32.mrb[1].mxu1 }
 0x3f9   :  { %v2726_v47 = vmul.f32 -1.442695, %v280_v45 }
 0x3fb   :  { %3633 = vpow2.f32 %v2726_v47 }
 0x3fe   :  { %v498_v49 = vpop.f32.mrb[2].mxu1 }
 0x3ff   :  { %v502_v50 = vadd.f32 %v498_v49, %v429_v48  ;;  %v3023_v51 = vpop.f32.mrb[3].mxu1 }
 0x401   :  { %v2732_v52 = vmul.f32 -1.442695, %v502_v50 }
 0x403   :  { %3635 = vpow2.f32 %v2732_v52 }
 0x404   :  { %3637 = vtanh.f32 %v280_v45 }
 0x405   :  { %v3634_v53 = vpop.eup %3633 }
 0x406   :  { %v287_v54 = vadd.f32 1.0, %v3634_v53  ;;  %v742_v53 = vld [vmem:[#allocation2 + $0x10] sm:$0xff] }
 0x408   :  { %3639 = vrcp.f32 %v287_v54 }
 0x409   :  { %3641 = vtanh.f32 %v502_v50 }
 0x40d   :  { %v3636_v55 = vpop.eup %3635 }
 0x40e   :  { %v507_v56 = vadd.f32 1.0, %v3636_v55  ;;  %v3638_v57 = vpop.eup %3637 }
 0x410   :  { %3643 = vrcp.f32 %v507_v56 }
 0x412   :  { %v3640_v58 = vpop.eup %3639 }
 0x413   :  { %v290_v59 = vsel %vm4075_vm3, %v3638_v57, %v3640_v58  ;;  %v3642_v60 = vpop.eup %3641 }
 0x414   :  { %293 = vrot.lane.b32.xlu0 %v290_v59, %s3946_s4  ;;  %v291_v6 = vmul.f32 0.0, %v290_v59 }
 0x41a   :  { %v3644_v61 = vpop.eup %3643 }
 0x41b   :  { %v510_v62 = vsel %vm4075_vm3, %v3642_v60, %v3644_v61 }
 0x41c   :  { %513 = vrot.lane.b32.xlu1 %v510_v62, %s3946_s4  ;;  %v511_v10 = vmul.f32 %v510_v62, %v4083_v25  ;;  %v321_v25 = vld [vmem:[#allocation7 + $0x78] sm:$0xff] }
 0x41d   :  { %v4153_v27 = vpack.c.bf16 %v321_v25, %v320_v24 }
 0x41f   :  { %3396 = vmatpush3.bf16.msra.mxu0 %v4153_v27  ;;  %3426 = vmatpush3.bf16.msra.mxu1 %v4153_v27 }
 0x420   :  { %3403 = vmatprep.subr.bf16.mxu0 %v3943_v0  ;;  %3433 = vmatprep.subr.bf16.mxu1 %v3943_v0 }
 0x486   :  { %v294_v63 = vpop.permute.xlu0 %293 }
 0x487   :  { %v296_v2 = vmul.f32 %v294_v63, %v290_v59 }
 0x489   :  { %298 = vrot.lane.b32.xlu0 %v296_v2, %s3947_s9 }
 0x48e   :  { %v514_v3 = vpop.permute.xlu1 %513 }
 0x48f   :  { %v516_v4 = vmul.f32 %v514_v3, %v510_v62 }
 0x491   :  { %518 = vrot.lane.b32.xlu1 %v516_v4, %s3947_s9 }
 0x4fb   :  { %v299_v8 = vpop.permute.xlu0 %298 }
 0x4fc   :  { %v4129_v9 = vadd.f32 %v299_v8, %v291_v6 }
 0x4fe   :  { %3645 = vtanh.f32 %v4129_v9 }
 0x503   :  { %v519_v11 = vpop.permute.xlu1 %518 }
 0x504   :  { %v4133_v12 = vadd.f32 %v519_v11, %v511_v10 }
 0x506   :  { %3647 = vtanh.f32 %v4133_v12 }
 0x508   :  { %v3646_v19 = vpop.eup %3645 }
 0x509   :  { %304 = vrot.lane.b32.xlu0 %v3646_v19, %s3946_s4 }
 0x510   :  { %v3648_v26 = vpop.eup %3647 }
 0x511   :  { %524 = vrot.lane.b32.xlu1 %v3648_v26, %s3946_s4 }
 0x57b   :  { %v305_v28 = vpop.permute.xlu0 %304 }
 0x57c   :  { %v307_v30 = vmul.f32 %v305_v28, %v290_v59 }
 0x57e   :  { %309 = vrot.lane.b32.xlu0 %v307_v30, %s3947_s9 }
 0x582   :  { %532 = vrot.lane.b32.xlu0 %v307_v30, %s3946_s4 }
 0x583   :  { %v525_v32 = vpop.permute.xlu1 %524 }
 0x584   :  { %v527_v33 = vmul.f32 %v525_v32, %v510_v62 }
 0x586   :  { %529 = vrot.lane.b32.xlu1 %v527_v33, %s3947_s9 }
 0x5f0   :  { %v310_v35 = vpop.permute.xlu0 %309 }
 0x5f1   :  { %v312_v36 = vsel %vm89_vm4, %v310_v35, 0.0 }
 0x5f2   :  { %3011 = vmatmul.mubr.msk.f32.vlgmr.msra.gmra.mrb[2].mxu0 %vm209_vm5, %v312_v36 }
 0x5f3   :  { %3405 = vmatpush3.bf16.msra.mxu0 %v4086_v29  ;;  %3040 = vmatprep.mubr.msk.f32.mxu0 %vm3944_vm0, %v3945_v1 }
 0x5f4   :  { %3406 = vmatprep.subr.bf16.mxu0 %v3943_v0  ;;  %v533_v39 = vpop.permute.xlu0 %532 }
 0x5f7   :  { %3408 = vmatpush3.bf16.msra.mxu0 %v4089_v31 }
 0x5f8   :  { %3409 = vmatprep.subr.bf16.mxu0 %v3943_v0  ;;  %v530_v37 = vpop.permute.xlu1 %529 }
 0x5f9   :  { %v535_v40 = vsel %vm89_vm4, %v530_v37, %v533_v39 }
 0x5fb   :  { %3411 = vmatpush3.bf16.msra.mxu0 %v4093_v34 }
 0x5fc   :  { %3412 = vmatprep.subr.bf16.mxu0 %v3943_v0 }
 0x5ff   :  { %3414 = vmatpush3.bf16.msra.mxu0 %v4098_v38 }
 0x600   :  { %3427 = vmatprep.subr.bf16.mxu0 %v3943_v0 }
 0x602   :  { %3041 = vmatmul.mubr.msk.f32.vlgmr.msra.gmra.mrb[4].mxu0 %vm209_vm5, %v535_v40 }
 0x603   :  { %3429 = vmatpush3.bf16.msra.mxu0 %v4064_v5  ;;  %3070 = vmatprep.mubr.msk.f32.mxu0 %vm3944_vm0, %v3945_v1 }
 0x604   :  { %3430 = vmatprep.subr.bf16.mxu0 %v3943_v0 }
 0x607   :  { %3432 = vmatpush3.bf16.msra.mxu0 %v4067_v7 }
 0x608   :  { %3445 = vmatprep.subr.bf16.mxu0 %v3943_v0 }
 0x60a   :  { %3071 = vmatmul.mubr.msk.f32.vlgmr.msra.gmra.mrb[6].mxu0 %vm89_vm4, %v530_v37 }
 0x60b   :  { %3447 = vmatpush3.bf16.msra.mxu0 %v4136_v16  ;;  %3108 = vmatprep.mubr.msk.f32.mxu0 %vm3944_vm0, %v3945_v1 }
 0x60c   :  { %3448 = vmatprep.subr.bf16.mxu0 %v3943_v0 }
 0x60f   :  { %3450 = vmatpush3.bf16.msra.mxu0 %v4140_v20 }
 0x610   :  { %3451 = vmatprep.subr.bf16.mxu0 %v3943_v0 }
 0x613   :  { %3453 = vmatpush3.bf16.msra.mxu0 %v4146_v23 }
 0x614   :  { %3454 = vmatprep.subr.bf16.mxu0 %v3943_v0 }
 0x617   :  { %3456 = vmatpush3.bf16.msra.mxu0 %v4153_v27 }
 0x618   :  { %3463 = vmatprep.subr.bf16.mxu0 %v3943_v0 }
 0x6c5   :  { %v399_v42 = vpop.f32.mrb[2].mxu0 }
 0x6c6   :  { %v400_v44 = vadd.f32 %v4199_v41, %v399_v42  ;;  %v3012_v45 = vpop.f32.mrb[3].mxu0 }
 0x6c8   :  { %v2730_v46 = vmul.f32 -1.442695, %v400_v44 }
 0x6ca   :  { %3649 = vpow2.f32 %v2730_v46 }
 0x6cb   :  { %3651 = vtanh.f32 %v400_v44 }
 0x6d4   :  { %v3650_v47 = vpop.eup %3649 }
 0x6d5   :  { %v407_v48 = vadd.f32 1.0, %v3650_v47  ;;  %v605_v49 = vpop.f32.mrb[4].mxu0  ;;  %v3652_v57 = vpop.eup %3651 }
 0x6d6   :  { %v606_v50 = vadd.f32 %v4118_v43, %v605_v49  ;;  %v3042_v51 = vpop.f32.mrb[5].mxu0 }
 0x6d7   :  { %3653 = vrcp.f32 %v407_v48 }
 0x6d8   :  { %v2734_v52 = vmul.f32 -1.442695, %v606_v50 }
 0x6da   :  { %3655 = vpow2.f32 %v2734_v52 }
 0x6dd   :  { %v811_v54 = vpop.f32.mrb[6].mxu0 }
 0x6de   :  { %v815_v55 = vadd.f32 %v811_v54, %v742_v53  ;;  %v3072_v56 = vpop.f32.mrb[7].mxu0 }
 0x6e0   :  { %v2738_v58 = vmul.f32 -1.442695, %v815_v55 }
 0x6e1   :  { %v3654_v59 = vpop.eup %3653 }
 0x6e2   :  { %3657 = vpow2.f32 %v2738_v58  ;;  %v410_v60 = vsel %vm4075_vm3, %v3652_v57, %v3654_v59 }
 0x6e3   :  { %413 = vrot.lane.b32.xlu1 %v410_v60, %s3946_s4  ;;  %3659 = vtanh.f32 %v606_v50  ;;  %v411_v22 = vmul.f32 0.0, %v410_v60 }
 0x6e4   :  { %v3656_v61 = vpop.eup %3655 }
 0x6e5   :  { %v613_v62 = vadd.f32 1.0, %v3656_v61 }
 0x6e7   :  { %3661 = vrcp.f32 %v613_v62  ;;  %v1055_v62 = vld [vmem:[#allocation2 + $0x18] sm:$0xff] }
 0x6e8   :  { %3663 = vtanh.f32 %v815_v55 }
 0x6ec   :  { %v3658_v63 = vpop.eup %3657 }
 0x6ed   :  { %v820_v2 = vadd.f32 1.0, %v3658_v63  ;;  %v3660_v3 = vpop.eup %3659 }
 0x6ef   :  { %3665 = vrcp.f32 %v820_v2 }
 0x6f1   :  { %v3662_v4 = vpop.eup %3661 }
 0x6f2   :  { %v616_v6 = vsel %vm4075_vm3, %v3660_v3, %v3662_v4  ;;  %v3664_v8 = vpop.eup %3663 }
 0x6f3   :  { %619 = vrot.lane.b32.xlu0 %v616_v6, %s3946_s4  ;;  %v617_v28 = vmul.f32 %v616_v6, %v4129_v9 }
 0x6f9   :  { %v3666_v10 = vpop.eup %3665 }
 0x6fa   :  { %v823_v11 = vsel %vm4075_vm3, %v3664_v8, %v3666_v10 }
 0x6fb   :  { %826 = vrot.lane.b32.xlu1 %v823_v11, %s3946_s4  ;;  %v824_v33 = vmul.f32 %v823_v11, %v4133_v12 }
 0x755   :  { %v414_v13 = vpop.permute.xlu1 %413 }
 0x756   :  { %v416_v14 = vmul.f32 %v414_v13, %v410_v60 }
 0x758   :  { %418 = vrot.lane.b32.xlu0 %v416_v14, %s3947_s9 }
 0x765   :  { %v620_v15 = vpop.permute.xlu0 %619 }
 0x766   :  { %v622_v18 = vmul.f32 %v620_v15, %v616_v6 }
 0x768   :  { %624 = vrot.lane.b32.xlu1 %v622_v18, %s3947_s9 }
 0x76d   :  { %v827_v19 = vpop.permute.xlu1 %826 }
 0x76e   :  { %v829_v21 = vmul.f32 %v827_v19, %v823_v11 }
 0x770   :  { %831 = vrot.lane.b32.xlu0 %v829_v21, %s3947_s9 }
 0x7ca   :  { %v419_v24 = vpop.permute.xlu0 %418 }
 0x7cb   :  { %v4215_v25 = vadd.f32 %v419_v24, %v411_v22 }
 0x7cd   :  { %3667 = vtanh.f32 %v4215_v25 }
 0x7d7   :  { %v3668_v26 = vpop.eup %3667 }
 0x7d8   :  { %424 = vrot.lane.b32.xlu1 %v3668_v26, %s3946_s4 }
 0x7da   :  { %v625_v30 = vpop.permute.xlu1 %624 }
 0x7db   :  { %v4220_v32 = vadd.f32 %v625_v30, %v617_v28 }
 0x7dd   :  { %3669 = vtanh.f32 %v4220_v32 }
 0x7e2   :  { %v832_v35 = vpop.permute.xlu0 %831 }
 0x7e3   :  { %v4224_v36 = vadd.f32 %v832_v35, %v824_v33 }
 0x7e5   :  { %3671 = vtanh.f32 %v4224_v36 }
 0x7e7   :  { %v3670_v37 = vpop.eup %3669 }
 0x7e8   :  { %630 = vrot.lane.b32.xlu0 %v3670_v37, %s3946_s4 }
 0x7ef   :  { %v3672_v39 = vpop.eup %3671 }
 0x7f0   :  { %837 = vrot.lane.b32.xlu1 %v3672_v39, %s3946_s4 }
 0x84a   :  { %v425_v40 = vpop.permute.xlu1 %424 }
 0x84b   :  { %v427_v9 = vmul.f32 %v425_v40, %v410_v60 }
 0x84d   :  { %639 = vrot.lane.b32.xlu1 %v427_v9, %s3946_s4 }
 0x85a   :  { %v631_v42 = vpop.permute.xlu0 %630 }
 0x85b   :  { %v633_v44 = vmul.f32 %v631_v42, %v616_v6 }
 0x85d   :  { %635 = vrot.lane.b32.xlu0 %v633_v44, %s3947_s9  ;;  %845 = vrot.lane.b32.xlu1 %v633_v44, %s3946_s4 }
 0x862   :  { %v838_v12 = vpop.permute.xlu1 %837 }
 0x863   :  { %v840_v45 = vmul.f32 %v838_v12, %v823_v11 }
 0x865   :  { %842 = vrot.lane.b32.xlu0 %v840_v45, %s3947_s9 }
 0x8bf   :  { %v640_v46 = vpop.permute.xlu1 %639 }
 0x8cf   :  { %v636_v47 = vpop.permute.xlu0 %635  ;;  %v846_v50 = vpop.permute.xlu1 %845 }
 0x8d0   :  { %v642_v48 = vsel %vm89_vm4, %v636_v47, %v640_v46 }
 0x8d1   :  { %3060 = vmatmul.mubr.msk.f32.vlgmr.msra.gmra.mrb[4].mxu1 %vm209_vm5, %v642_v48 }
 0x8d2   :  { %3435 = vmatpush3.bf16.msra.mxu1 %v4086_v29  ;;  %3089 = vmatprep.mubr.msk.f32.mxu1 %vm3944_vm0, %v3945_v1 }
 0x8d3   :  { %3436 = vmatprep.subr.bf16.mxu1 %v3943_v0 }
 0x8d6   :  { %3438 = vmatpush3.bf16.msra.mxu1 %v4089_v31 }
 0x8d7   :  { %3439 = vmatprep.subr.bf16.mxu1 %v3943_v0  ;;  %v843_v49 = vpop.permute.xlu0 %842 }
 0x8d8   :  { %v848_v51 = vsel %vm89_vm4, %v843_v49, %v846_v50 }
 0x8da   :  { %3441 = vmatpush3.bf16.msra.mxu1 %v4093_v34 }
 0x8db   :  { %3442 = vmatprep.subr.bf16.mxu1 %v3943_v0 }
 0x8de   :  { %3444 = vmatpush3.bf16.msra.mxu1 %v4098_v38 }
 0x8df   :  { %3457 = vmatprep.subr.bf16.mxu1 %v3943_v0 }
 0x8e1   :  { %3090 = vmatmul.mubr.msk.f32.vlgmr.msra.gmra.mrb[6].mxu1 %vm209_vm5, %v848_v51 }
 0x8e2   :  { %3459 = vmatpush3.bf16.msra.mxu1 %v4064_v5  ;;  %3119 = vmatprep.mubr.msk.f32.mxu1 %vm3944_vm0, %v3945_v1 }
 0x8e3   :  { %3460 = vmatprep.subr.bf16.mxu1 %v3943_v0 }
 0x8e6   :  { %3462 = vmatpush3.bf16.msra.mxu1 %v4067_v7 }
 0x8e7   :  { %3475 = vmatprep.subr.bf16.mxu1 %v3943_v0 }
 0x8e9   :  { %3120 = vmatmul.mubr.msk.f32.vlgmr.msra.gmra.mrb[8].mxu1 %vm89_vm4, %v843_v49 }
 0x8ea   :  { %3477 = vmatpush3.bf16.msra.mxu1 %v4136_v16  ;;  %3157 = vmatprep.mubr.msk.f32.mxu1 %vm3944_vm0, %v3945_v1 }
 0x8eb   :  { %3478 = vmatprep.subr.bf16.mxu1 %v3943_v0 }
 0x8ee   :  { %3480 = vmatpush3.bf16.msra.mxu1 %v4140_v20 }
 0x8ef   :  { %3481 = vmatprep.subr.bf16.mxu1 %v3943_v0 }
 0x8f2   :  { %3483 = vmatpush3.bf16.msra.mxu1 %v4146_v23 }
 0x8f3   :  { %3484 = vmatprep.subr.bf16.mxu1 %v3943_v0 }
 0x8f6   :  { %3486 = vmatpush3.bf16.msra.mxu1 %v4153_v27 }
 0x8f7   :  { %3493 = vmatprep.subr.bf16.mxu1 %v3943_v0 }
 0x9a4   :  { %v712_v52 = vpop.f32.mrb[4].mxu1 }
 0x9a5   :  { %v713_v53 = vadd.f32 %v4199_v41, %v712_v52  ;;  %v3061_v54 = vpop.f32.mrb[5].mxu1 }
 0x9a7   :  { %v2736_v55 = vmul.f32 -1.442695, %v713_v53 }
 0x9a9   :  { %3673 = vpow2.f32 %v2736_v55 }
 0x9aa   :  { %3675 = vtanh.f32 %v713_v53 }
 0x9b3   :  { %v3674_v56 = vpop.eup %3673 }
 0x9b4   :  { %v720_v57 = vadd.f32 1.0, %v3674_v56  ;;  %v918_v58 = vpop.f32.mrb[6].mxu1  ;;  %v3676_v4 = vpop.eup %3675 }
 0x9b5   :  { %v919_v59 = vadd.f32 %v4118_v43, %v918_v58  ;;  %v3091_v60 = vpop.f32.mrb[7].mxu1 }
 0x9b6   :  { %3677 = vrcp.f32 %v720_v57 }
 0x9b7   :  { %v2740_v61 = vmul.f32 -1.442695, %v919_v59 }
 0x9b9   :  { %3679 = vpow2.f32 %v2740_v61 }
 0x9bc   :  { %v1124_v63 = vpop.f32.mrb[8].mxu1 }
 0x9bd   :  { %v1128_v2 = vadd.f32 %v1124_v63, %v1055_v62  ;;  %v3121_v3 = vpop.f32.mrb[9].mxu1 }
 0x9bf   :  { %v2744_v6 = vmul.f32 -1.442695, %v1128_v2 }
 0x9c0   :  { %v3678_v8 = vpop.eup %3677 }
 0x9c1   :  { %3681 = vpow2.f32 %v2744_v6  ;;  %v723_v10 = vsel %vm4075_vm3, %v3676_v4, %v3678_v8 }
 0x9c2   :  { %726 = vrot.lane.b32.xlu0 %v723_v10, %s3946_s4  ;;  %3683 = vtanh.f32 %v919_v59  ;;  %v724_v40 = vmul.f32 %v723_v10, %v4215_v25 }
 0x9c3   :  { %v3680_v11 = vpop.eup %3679 }
 0x9c4   :  { %v926_v13 = vadd.f32 1.0, %v3680_v11 }
 0x9c6   :  { %3685 = vrcp.f32 %v926_v13  ;;  %v1368_v13 = vld [vmem:[#allocation2 + $0x20] sm:$0xff] }
 0x9c7   :  { %3687 = vtanh.f32 %v1128_v2 }
 0x9cb   :  { %v3682_v14 = vpop.eup %3681 }
 0x9cc   :  { %v1133_v15 = vadd.f32 1.0, %v3682_v14  ;;  %v3684_v18 = vpop.eup %3683 }
 0x9ce   :  { %3689 = vrcp.f32 %v1133_v15 }
 0x9d0   :  { %v3686_v19 = vpop.eup %3685 }
 0x9d1   :  { %v929_v21 = vsel %vm4075_vm3, %v3684_v18, %v3686_v19  ;;  %v3688_v22 = vpop.eup %3687 }
 0x9d2   :  { %932 = vrot.lane.b32.xlu1 %v929_v21, %s3946_s4  ;;  %v930_v12 = vmul.f32 %v929_v21, %v4220_v32 }
 0x9d8   :  { %v3690_v24 = vpop.eup %3689 }
 0x9d9   :  { %v1136_v26 = vsel %vm4075_vm3, %v3688_v22, %v3690_v24 }
 0x9da   :  { %1139 = vrot.lane.b32.xlu0 %v1136_v26, %s3946_s4  ;;  %v1137_v47 = vmul.f32 %v1136_v26, %v4224_v36 }
 0xa34   :  { %v727_v28 = vpop.permute.xlu0 %726 }
 0xa35   :  { %v729_v30 = vmul.f32 %v727_v28, %v723_v10 }
 0xa37   :  { %731 = vrot.lane.b32.xlu1 %v729_v30, %s3947_s9 }
 0xa44   :  { %v933_v33 = vpop.permute.xlu1 %932 }
 0xa45   :  { %v935_v35 = vmul.f32 %v933_v33, %v929_v21 }
 0xa47   :  { %937 = vrot.lane.b32.xlu0 %v935_v35, %s3947_s9 }
 0xa4c   :  { %v1140_v37 = vpop.permute.xlu0 %1139 }
 0xa4d   :  { %v1142_v39 = vmul.f32 %v1140_v37, %v1136_v26 }
 0xa4f   :  { %1144 = vrot.lane.b32.xlu1 %v1142_v39, %s3947_s9 }
 0xaa9   :  { %v732_v9 = vpop.permute.xlu1 %731 }
 0xaaa   :  { %v4279_v42 = vadd.f32 %v732_v9, %v724_v40 }
 0xaac   :  { %3691 = vtanh.f32 %v4279_v42 }
 0xab6   :  { %v3692_v44 = vpop.eup %3691 }
 0xab7   :  { %737 = vrot.lane.b32.xlu0 %v3692_v44, %s3946_s4 }
 0xab9   :  { %v938_v45 = vpop.permute.xlu0 %937 }
 0xaba   :  { %v4284_v46 = vadd.f32 %v938_v45, %v930_v12 }
 0xabc   :  { %3693 = vtanh.f32 %v4284_v46 }
 0xac1   :  { %v1145_v48 = vpop.permute.xlu1 %1144 }
 0xac2   :  { %v4288_v49 = vadd.f32 %v1145_v48, %v1137_v47 }
 0xac4   :  { %3695 = vtanh.f32 %v4288_v49 }
 0xac6   :  { %v3694_v25 = vpop.eup %3693 }
 0xac7   :  { %943 = vrot.lane.b32.xlu1 %v3694_v25, %s3946_s4 }
 0xace   :  { %v3696_v50 = vpop.eup %3695 }
 0xacf   :  { %1150 = vrot.lane.b32.xlu0 %v3696_v50, %s3946_s4 }
 0xb29   :  { %v738_v51 = vpop.permute.xlu0 %737 }
 0xb2a   :  { %v740_v32 = vmul.f32 %v738_v51, %v723_v10 }
 0xb2c   :  { %952 = vrot.lane.b32.xlu0 %v740_v32, %s3946_s4 }
 0xb39   :  { %v944_v52 = vpop.permute.xlu1 %943 }
 0xb3a   :  { %v946_v53 = vmul.f32 %v944_v52, %v929_v21 }
 0xb3c   :  { %948 = vrot.lane.b32.xlu1 %v946_v53, %s3947_s9  ;;  %1158 = vrot.lane.b32.xlu0 %v946_v53, %s3946_s4 }
 0xb41   :  { %v1151_v36 = vpop.permute.xlu0 %1150 }
 0xb42   :  { %v1153_v54 = vmul.f32 %v1151_v36, %v1136_v26 }
 0xb44   :  { %1155 = vrot.lane.b32.xlu1 %v1153_v54, %s3947_s9 }
 0xb9e   :  { %v953_v55 = vpop.permute.xlu0 %952 }
 0xbae   :  { %v949_v56 = vpop.permute.xlu1 %948  ;;  %v1159_v59 = vpop.permute.xlu0 %1158 }
 0xbaf   :  { %v955_v57 = vsel %vm89_vm4, %v949_v56, %v953_v55 }
 0xbb0   :  { %3109 = vmatmul.mubr.msk.f32.vlgmr.msra.gmra.mrb[8].mxu0 %vm209_vm5, %v955_v57 }
 0xbb1   :  { %3465 = vmatpush3.bf16.msra.mxu0 %v4086_v29  ;;  %3138 = vmatprep.mubr.msk.f32.mxu0 %vm3944_vm0, %v3945_v1 }
 0xbb2   :  { %3466 = vmatprep.subr.bf16.mxu0 %v3943_v0 }
 0xbb5   :  { %3468 = vmatpush3.bf16.msra.mxu0 %v4089_v31 }
 0xbb6   :  { %3469 = vmatprep.subr.bf16.mxu0 %v3943_v0  ;;  %v1156_v58 = vpop.permute.xlu1 %1155 }
 0xbb7   :  { %v1161_v60 = vsel %vm89_vm4, %v1156_v58, %v1159_v59 }
 0xbb9   :  { %3471 = vmatpush3.bf16.msra.mxu0 %v4093_v34 }
 0xbba   :  { %3472 = vmatprep.subr.bf16.mxu0 %v3943_v0 }
 0xbbd   :  { %3474 = vmatpush3.bf16.msra.mxu0 %v4098_v38 }
 0xbbe   :  { %3487 = vmatprep.subr.bf16.mxu0 %v3943_v0 }
 0xbc0   :  { %3139 = vmatmul.mubr.msk.f32.vlgmr.msra.gmra.mrb[10].mxu0 %vm209_vm5, %v1161_v60 }
 0xbc1   :  { %3489 = vmatpush3.bf16.msra.mxu0 %v4064_v5  ;;  %3168 = vmatprep.mubr.msk.f32.mxu0 %vm3944_vm0, %v3945_v1 }
 0xbc2   :  { %3490 = vmatprep.subr.bf16.mxu0 %v3943_v0 }
 0xbc5   :  { %3492 = vmatpush3.bf16.msra.mxu0 %v4067_v7 }
 0xbc6   :  { %3505 = vmatprep.subr.bf16.mxu0 %v3943_v0 }
 0xbc8   :  { %3169 = vmatmul.mubr.msk.f32.vlgmr.msra.gmra.mrb[12].mxu0 %vm89_vm4, %v1156_v58 }
 0xbc9   :  { %3507 = vmatpush3.bf16.msra.mxu0 %v4136_v16  ;;  %3206 = vmatprep.mubr.msk.f32.mxu0 %vm3944_vm0, %v3945_v1 }
 0xbca   :  { %3508 = vmatprep.subr.bf16.mxu0 %v3943_v0 }
 0xbcd   :  { %3510 = vmatpush3.bf16.msra.mxu0 %v4140_v20 }
 0xbce   :  { %3511 = vmatprep.subr.bf16.mxu0 %v3943_v0 }
 0xbd1   :  { %3513 = vmatpush3.bf16.msra.mxu0 %v4146_v23 }
 0xbd2   :  { %3514 = vmatprep.subr.bf16.mxu0 %v3943_v0 }
 0xbd5   :  { %3516 = vmatpush3.bf16.msra.mxu0 %v4153_v27 }
 0xbd6   :  { %3523 = vmatprep.subr.bf16.mxu0 %v3943_v0 }
 0xc83   :  { %v1025_v61 = vpop.f32.mrb[8].mxu0 }
 0xc84   :  { %v1026_v62 = vadd.f32 %v4199_v41, %v1025_v61  ;;  %v3110_v63 = vpop.f32.mrb[9].mxu0 }
 0xc86   :  { %v2742_v2 = vmul.f32 -1.442695, %v1026_v62 }
 0xc88   :  { %3697 = vpow2.f32 %v2742_v2 }
 0xc89   :  { %3699 = vtanh.f32 %v1026_v62 }
 0xc92   :  { %v3698_v3 = vpop.eup %3697 }
 0xc93   :  { %v1033_v4 = vadd.f32 1.0, %v3698_v3  ;;  %v1231_v6 = vpop.f32.mrb[10].mxu0  ;;  %v3700_v19 = vpop.eup %3699 }
 0xc94   :  { %v1232_v8 = vadd.f32 %v4118_v43, %v1231_v6  ;;  %v3140_v10 = vpop.f32.mrb[11].mxu0 }
 0xc95   :  { %3701 = vrcp.f32 %v1033_v4 }
 0xc96   :  { %v2746_v11 = vmul.f32 -1.442695, %v1232_v8 }
 0xc98   :  { %3703 = vpow2.f32 %v2746_v11 }
 0xc9b   :  { %v1437_v14 = vpop.f32.mrb[12].mxu0 }
 0xc9c   :  { %v1441_v15 = vadd.f32 %v1437_v14, %v1368_v13  ;;  %v3170_v18 = vpop.f32.mrb[13].mxu0 }
 0xc9e   :  { %v2750_v21 = vmul.f32 -1.442695, %v1441_v15 }
 0xc9f   :  { %v3702_v22 = vpop.eup %3701 }
 0xca0   :  { %3705 = vpow2.f32 %v2750_v21  ;;  %v1036_v24 = vsel %vm4075_vm3, %v3700_v19, %v3702_v22 }
 0xca1   :  { %1039 = vrot.lane.b32.xlu1 %v1036_v24, %s3946_s4  ;;  %3707 = vtanh.f32 %v1232_v8  ;;  %v1037_v51 = vmul.f32 %v1036_v24, %v4279_v42 }
 0xca2   :  { %v3704_v26 = vpop.eup %3703 }
 0xca3   :  { %v1239_v28 = vadd.f32 1.0, %v3704_v26 }
 0xca5   :  { %3709 = vrcp.f32 %v1239_v28  ;;  %v1681_v28 = vld [vmem:[#allocation2 + $0x28] sm:$0xff] }
 0xca6   :  { %3711 = vtanh.f32 %v1441_v15 }
 0xcaa   :  { %v3706_v30 = vpop.eup %3705 }
 0xcab   :  { %v1446_v33 = vadd.f32 1.0, %v3706_v30  ;;  %v3708_v35 = vpop.eup %3707 }
 0xcad   :  { %3713 = vrcp.f32 %v1446_v33 }
 0xcaf   :  { %v3710_v37 = vpop.eup %3709 }
 0xcb0   :  { %v1242_v39 = vsel %vm4075_vm3, %v3708_v35, %v3710_v37  ;;  %v3712_v40 = vpop.eup %3711 }
 0xcb1   :  { %1245 = vrot.lane.b32.xlu0 %v1242_v39, %s3946_s4  ;;  %v1243_v36 = vmul.f32 %v1242_v39, %v4284_v46 }
 0xcb7   :  { %v3714_v9 = vpop.eup %3713 }
 0xcb8   :  { %v1449_v44 = vsel %vm4075_vm3, %v3712_v40, %v3714_v9 }
 0xcb9   :  { %1452 = vrot.lane.b32.xlu1 %v1449_v44, %s3946_s4  ;;  %v1450_v56 = vmul.f32 %v1449_v44, %v4288_v49 }
 0xd13   :  { %v1040_v12 = vpop.permute.xlu1 %1039 }
 0xd14   :  { %v1042_v45 = vmul.f32 %v1040_v12, %v1036_v24 }
 0xd16   :  { %1044 = vrot.lane.b32.xlu0 %v1042_v45, %s3947_s9 }
 0xd23   :  { %v1246_v47 = vpop.permute.xlu0 %1245 }
 0xd24   :  { %v1248_v48 = vmul.f32 %v1246_v47, %v1242_v39 }
 0xd26   :  { %1250 = vrot.lane.b32.xlu1 %v1248_v48, %s3947_s9 }
 0xd2b   :  { %v1453_v25 = vpop.permute.xlu1 %1452 }
 0xd2c   :  { %v1455_v50 = vmul.f32 %v1453_v25, %v1449_v44 }
 0xd2e   :  { %1457 = vrot.lane.b32.xlu0 %v1455_v50, %s3947_s9 }
 0xd88   :  { %v1045_v32 = vpop.permute.xlu0 %1044 }
 0xd89   :  { %v4343_v52 = vadd.f32 %v1045_v32, %v1037_v51 }
 0xd8b   :  { %3715 = vtanh.f32 %v4343_v52 }
 0xd95   :  { %v3716_v53 = vpop.eup %3715 }
 0xd96   :  { %1050 = vrot.lane.b32.xlu1 %v3716_v53, %s3946_s4 }
 0xd98   :  { %v1251_v54 = vpop.permute.xlu1 %1250 }
 0xd99   :  { %v4348_v55 = vadd.f32 %v1251_v54, %v1243_v36 }
 0xd9b   :  { %3717 = vtanh.f32 %v4348_v55 }
 0xda0   :  { %v1458_v57 = vpop.permute.xlu0 %1457 }
 0xda1   :  { %v4352_v58 = vadd.f32 %v1458_v57, %v1450_v56 }
 0xda3   :  { %3719 = vtanh.f32 %v4352_v58 }
 0xda5   :  { %v3718_v42 = vpop.eup %3717 }
 0xda6   :  { %1256 = vrot.lane.b32.xlu0 %v3718_v42, %s3946_s4 }
 0xdad   :  { %v3720_v59 = vpop.eup %3719 }
 0xdae   :  { %1463 = vrot.lane.b32.xlu1 %v3720_v59, %s3946_s4 }
 0xe08   :  { %v1051_v60 = vpop.permute.xlu1 %1050 }
 0xe09   :  { %v1053_v46 = vmul.f32 %v1051_v60, %v1036_v24 }
 0xe0b   :  { %1265 = vrot.lane.b32.xlu1 %v1053_v46, %s3946_s4 }
 0xe18   :  { %v1257_v61 = vpop.permute.xlu0 %1256 }
 0xe19   :  { %v1259_v62 = vmul.f32 %v1257_v61, %v1242_v39 }
 0xe1b   :  { %1261 = vrot.lane.b32.xlu0 %v1259_v62, %s3947_s9  ;;  %1471 = vrot.lane.b32.xlu1 %v1259_v62, %s3946_s4 }
 0xe20   :  { %v1464_v49 = vpop.permute.xlu1 %1463 }
 0xe21   :  { %v1466_v63 = vmul.f32 %v1464_v49, %v1449_v44 }
 0xe23   :  { %1468 = vrot.lane.b32.xlu0 %v1466_v63, %s3947_s9 }
 0xe7d   :  { %v1266_v2 = vpop.permute.xlu1 %1265 }
 0xe8d   :  { %v1262_v3 = vpop.permute.xlu0 %1261  ;;  %v1472_v8 = vpop.permute.xlu1 %1471 }
 0xe8e   :  { %v1268_v4 = vsel %vm89_vm4, %v1262_v3, %v1266_v2 }
 0xe8f   :  { %3158 = vmatmul.mubr.msk.f32.vlgmr.msra.gmra.mrb[10].mxu1 %vm209_vm5, %v1268_v4 }
 0xe90   :  { %3495 = vmatpush3.bf16.msra.mxu1 %v4086_v29  ;;  %3187 = vmatprep.mubr.msk.f32.mxu1 %vm3944_vm0, %v3945_v1 }
 0xe91   :  { %3496 = vmatprep.subr.bf16.mxu1 %v3943_v0 }
 0xe94   :  { %3498 = vmatpush3.bf16.msra.mxu1 %v4089_v31 }
 0xe95   :  { %3499 = vmatprep.subr.bf16.mxu1 %v3943_v0  ;;  %v1469_v6 = vpop.permute.xlu0 %1468 }
 0xe96   :  { %v1474_v10 = vsel %vm89_vm4, %v1469_v6, %v1472_v8 }
 0xe98   :  { %3501 = vmatpush3.bf16.msra.mxu1 %v4093_v34 }
 0xe99   :  { %3502 = vmatprep.subr.bf16.mxu1 %v3943_v0 }
 0xe9c   :  { %3504 = vmatpush3.bf16.msra.mxu1 %v4098_v38 }
 0xe9d   :  { %3517 = vmatprep.subr.bf16.mxu1 %v3943_v0 }
 0xe9f   :  { %3188 = vmatmul.mubr.msk.f32.vlgmr.msra.gmra.mrb[12].mxu1 %vm209_vm5, %v1474_v10 }
 0xea0   :  { %3519 = vmatpush3.bf16.msra.mxu1 %v4064_v5  ;;  %3217 = vmatprep.mubr.msk.f32.mxu1 %vm3944_vm0, %v3945_v1 }
 0xea1   :  { %3520 = vmatprep.subr.bf16.mxu1 %v3943_v0 }
 0xea4   :  { %3522 = vmatpush3.bf16.msra.mxu1 %v4067_v7 }
 0xea5   :  { %3535 = vmatprep.subr.bf16.mxu1 %v3943_v0 }
 0xea7   :  { %3218 = vmatmul.mubr.msk.f32.vlgmr.msra.gmra.mrb[14].mxu1 %vm89_vm4, %v1469_v6 }
 0xea8   :  { %3537 = vmatpush3.bf16.msra.mxu1 %v4136_v16  ;;  %3255 = vmatprep.mubr.msk.f32.mxu1 %vm3944_vm0, %v3945_v1 }
 0xea9   :  { %3538 = vmatprep.subr.bf16.mxu1 %v3943_v0 }
 0xeac   :  { %3540 = vmatpush3.bf16.msra.mxu1 %v4140_v20 }
 0xead   :  { %3541 = vmatprep.subr.bf16.mxu1 %v3943_v0 }
 0xeb0   :  { %3543 = vmatpush3.bf16.msra.mxu1 %v4146_v23 }
 0xeb1   :  { %3544 = vmatprep.subr.bf16.mxu1 %v3943_v0 }
 0xeb4   :  { %3546 = vmatpush3.bf16.msra.mxu1 %v4153_v27 }
 0xeb5   :  { %3553 = vmatprep.subr.bf16.mxu1 %v3943_v0 }
 0xf62   :  { %v1338_v11 = vpop.f32.mrb[10].mxu1 }
 0xf63   :  { %v1339_v13 = vadd.f32 %v4199_v41, %v1338_v11  ;;  %v3159_v14 = vpop.f32.mrb[11].mxu1 }
 0xf65   :  { %v2748_v15 = vmul.f32 -1.442695, %v1339_v13 }
 0xf67   :  { %3721 = vpow2.f32 %v2748_v15 }
 0xf68   :  { %3723 = vtanh.f32 %v1339_v13 }
 0xf71   :  { %v3722_v18 = vpop.eup %3721 }
 0xf72   :  { %v1346_v19 = vadd.f32 1.0, %v3722_v18  ;;  %v1544_v21 = vpop.f32.mrb[12].mxu1  ;;  %v3724_v37 = vpop.eup %3723 }
 0xf73   :  { %v1545_v22 = vadd.f32 %v4118_v43, %v1544_v21  ;;  %v3189_v24 = vpop.f32.mrb[13].mxu1 }
 0xf74   :  { %3725 = vrcp.f32 %v1346_v19 }
 0xf75   :  { %v2752_v26 = vmul.f32 -1.442695, %v1545_v22 }
 0xf77   :  { %3727 = vpow2.f32 %v2752_v26 }
 0xf7a   :  { %v1750_v30 = vpop.f32.mrb[14].mxu1 }
 0xf7b   :  { %v1754_v33 = vadd.f32 %v1750_v30, %v1681_v28  ;;  %v3219_v35 = vpop.f32.mrb[15].mxu1 }
 0xf7d   :  { %v2756_v39 = vmul.f32 -1.442695, %v1754_v33 }
 0xf7e   :  { %v3726_v40 = vpop.eup %3725 }
 0xf7f   :  { %3729 = vpow2.f32 %v2756_v39  ;;  %v1349_v9 = vsel %vm4075_vm3, %v3724_v37, %v3726_v40  ;;  %v4460_v39 = vld [vmem:[%s4620_s3] ss:$0 sm:$0xff] }
 0xf80   :  { %1352 = vrot.lane.b32.xlu0 %v1349_v9, %s3946_s4  ;;  %3731 = vtanh.f32 %v1545_v22  ;;  %v1350_v59 = vmul.f32 %v1349_v9, %v4343_v52 }
 0xf81   :  { %v3728_v44 = vpop.eup %3727 }
 0xf82   :  { %v1552_v12 = vadd.f32 1.0, %v3728_v44 }
 0xf84   :  { %3733 = vrcp.f32 %v1552_v12  ;;  %v1994_v12 = vld [vmem:[#allocation2 + $0x30] sm:$0xff] }
 0xf85   :  { %3735 = vtanh.f32 %v1754_v33 }
 0xf89   :  { %v3730_v43 = vpop.eup %3729 }
 0xf8a   :  { %v1759_v45 = vadd.f32 1.0, %v3730_v43  ;;  %v3732_v47 = vpop.eup %3731 }
 0xf8c   :  { %3737 = vrcp.f32 %v1759_v45 }
 0xf8e   :  { %v3734_v48 = vpop.eup %3733 }
 0xf8f   :  { %v1555_v25 = vsel %vm4075_vm3, %v3732_v47, %v3734_v48  ;;  %v3736_v50 = vpop.eup %3735 }
 0xf90   :  { %1558 = vrot.lane.b32.xlu1 %v1555_v25, %s3946_s4  ;;  %v1556_v62 = vmul.f32 %v1555_v25, %v4348_v55 }
 0xf96   :  { %v3738_v51 = vpop.eup %3737 }
 0xf97   :  { %v1762_v32 = vsel %vm4075_vm3, %v3736_v50, %v3738_v51 }
 0xf98   :  { %1765 = vrot.lane.b32.xlu0 %v1762_v32, %s3946_s4  ;;  %v1763_v2 = vmul.f32 %v1762_v32, %v4352_v58 }
 0xff2   :  { %v1353_v53 = vpop.permute.xlu0 %1352 }
 0xff3   :  { %v1355_v36 = vmul.f32 %v1353_v53, %v1349_v9 }
 0xff5   :  { %1357 = vrot.lane.b32.xlu1 %v1355_v36, %s3947_s9 }
0x1002   :  { %v1559_v54 = vpop.permute.xlu1 %1558 }
0x1003   :  { %v1561_v56 = vmul.f32 %v1559_v54, %v1555_v25 }
0x1005   :  { %1563 = vrot.lane.b32.xlu0 %v1561_v56, %s3947_s9 }
0x100a   :  { %v1766_v57 = vpop.permute.xlu0 %1765 }
0x100b   :  { %v1768_v42 = vmul.f32 %v1766_v57, %v1762_v32 }
0x100d   :  { %1770 = vrot.lane.b32.xlu1 %v1768_v42, %s3947_s9 }
0x1067   :  { %v1358_v60 = vpop.permute.xlu1 %1357 }
0x1068   :  { %v4407_v46 = vadd.f32 %v1358_v60, %v1350_v59 }
0x106a   :  { %3739 = vtanh.f32 %v4407_v46 }
0x1074   :  { %v3740_v61 = vpop.eup %3739 }
0x1075   :  { %1363 = vrot.lane.b32.xlu0 %v3740_v61, %s3946_s4 }
0x1077   :  { %v1564_v49 = vpop.permute.xlu0 %1563 }
0x1078   :  { %v4412_v63 = vadd.f32 %v1564_v49, %v1556_v62 }
0x107a   :  { %3741 = vtanh.f32 %v4412_v63 }
0x107f   :  { %v1771_v3 = vpop.permute.xlu1 %1770 }
0x1080   :  { %v4416_v4 = vadd.f32 %v1771_v3, %v1763_v2 }
0x1082   :  { %3743 = vtanh.f32 %v4416_v4 }
0x1084   :  { %v3742_v52 = vpop.eup %3741 }
0x1085   :  { %1569 = vrot.lane.b32.xlu1 %v3742_v52, %s3946_s4 }
0x108c   :  { %v3744_v6 = vpop.eup %3743 }
0x108d   :  { %1776 = vrot.lane.b32.xlu0 %v3744_v6, %s3946_s4 }
0x10e7   :  { %v1364_v8 = vpop.permute.xlu0 %1363 }
0x10e8   :  { %v1366_v55 = vmul.f32 %v1364_v8, %v1349_v9 }
0x10ea   :  { %1578 = vrot.lane.b32.xlu0 %v1366_v55, %s3946_s4 }
0x10f7   :  { %v1570_v10 = vpop.permute.xlu1 %1569 }
0x10f8   :  { %v1572_v11 = vmul.f32 %v1570_v10, %v1555_v25 }
0x10fa   :  { %1574 = vrot.lane.b32.xlu1 %v1572_v11, %s3947_s9  ;;  %1784 = vrot.lane.b32.xlu0 %v1572_v11, %s3946_s4 }
0x10ff   :  { %v1777_v58 = vpop.permute.xlu0 %1776 }
0x1100   :  { %v1779_v13 = vmul.f32 %v1777_v58, %v1762_v32 }
0x1102   :  { %1781 = vrot.lane.b32.xlu1 %v1779_v13, %s3947_s9 }
0x115c   :  { %v1579_v14 = vpop.permute.xlu0 %1578 }
0x116c   :  { %v1575_v15 = vpop.permute.xlu1 %1574  ;;  %v1785_v21 = vpop.permute.xlu0 %1784 }
0x116d   :  { %v1581_v18 = vsel %vm89_vm4, %v1575_v15, %v1579_v14 }
0x116e   :  { %3207 = vmatmul.mubr.msk.f32.vlgmr.msra.gmra.mrb[14].mxu0 %vm209_vm5, %v1581_v18 }
0x116f   :  { %3525 = vmatpush3.bf16.msra.mxu0 %v4086_v29  ;;  %3236 = vmatprep.mubr.msk.f32.mxu0 %vm3944_vm0, %v3945_v1 }
0x1170   :  { %3526 = vmatprep.subr.bf16.mxu0 %v3943_v0 }
0x1173   :  { %3528 = vmatpush3.bf16.msra.mxu0 %v4089_v31 }
0x1174   :  { %3529 = vmatprep.subr.bf16.mxu0 %v3943_v0  ;;  %v1782_v19 = vpop.permute.xlu1 %1781 }
0x1175   :  { %v1787_v22 = vsel %vm89_vm4, %v1782_v19, %v1785_v21 }
0x1177   :  { %3531 = vmatpush3.bf16.msra.mxu0 %v4093_v34 }
0x1178   :  { %3532 = vmatprep.subr.bf16.mxu0 %v3943_v0 }
0x117b   :  { %3534 = vmatpush3.bf16.msra.mxu0 %v4098_v38 }
0x117c   :  { %3547 = vmatprep.subr.bf16.mxu0 %v3943_v0 }
0x117e   :  { %3237 = vmatmul.mubr.msk.f32.vlgmr.msra.gmra.mrb[16].mxu0 %vm209_vm5, %v1787_v22 }
0x117f   :  { %3549 = vmatpush3.bf16.msra.mxu0 %v4064_v5  ;;  %3266 = vmatprep.mubr.msk.f32.mxu0 %vm3944_vm0, %v3945_v1 }
0x1180   :  { %3550 = vmatprep.subr.bf16.mxu0 %v3943_v0 }
0x1183   :  { %3552 = vmatpush3.bf16.msra.mxu0 %v4067_v7 }
0x1184   :  { %3565 = vmatprep.subr.bf16.mxu0 %v3943_v0 }
0x1186   :  { %3267 = vmatmul.mubr.msk.f32.vlgmr.msra.gmra.mrb[18].mxu0 %vm89_vm4, %v1782_v19 }
0x1187   :  { %3567 = vmatpush3.bf16.msra.mxu0 %v4136_v16  ;;  %3304 = vmatprep.mubr.msk.f32.mxu0 %vm3944_vm0, %v3945_v1 }
0x1188   :  { %3568 = vmatprep.subr.bf16.mxu0 %v3943_v0 }
0x118b   :  { %3570 = vmatpush3.bf16.msra.mxu0 %v4140_v20 }
0x118c   :  { %3571 = vmatprep.subr.bf16.mxu0 %v3943_v0 }
0x118f   :  { %3573 = vmatpush3.bf16.msra.mxu0 %v4146_v23 }
0x1190   :  { %3574 = vmatprep.subr.bf16.mxu0 %v3943_v0 }
0x1193   :  { %3576 = vmatpush3.bf16.msra.mxu0 %v4153_v27 }
0x1194   :  { %3583 = vmatprep.subr.bf16.mxu0 %v3943_v0 }
0x1241   :  { %v1651_v24 = vpop.f32.mrb[14].mxu0 }
0x1242   :  { %v1652_v26 = vadd.f32 %v4199_v41, %v1651_v24  ;;  %v3208_v28 = vpop.f32.mrb[15].mxu0 }
0x1244   :  { %v2754_v30 = vmul.f32 -1.442695, %v1652_v26 }
0x1246   :  { %3745 = vpow2.f32 %v2754_v30 }
0x1247   :  { %3747 = vtanh.f32 %v1652_v26 }
0x1250   :  { %v3746_v33 = vpop.eup %3745 }
0x1251   :  { %v1659_v35 = vadd.f32 1.0, %v3746_v33  ;;  %v1857_v37 = vpop.f32.mrb[16].mxu0  ;;  %v3748_v47 = vpop.eup %3747 }
0x1252   :  { %v1858_v40 = vadd.f32 %v4460_v39, %v1857_v37  ;;  %v3238_v9 = vpop.f32.mrb[17].mxu0 }
0x1253   :  { %3749 = vrcp.f32 %v1659_v35 }
0x1254   :  { %v2758_v44 = vmul.f32 -1.442695, %v1858_v40 }
0x1256   :  { %3751 = vpow2.f32 %v2758_v44 }
0x1259   :  { %v2063_v41 = vpop.f32.mrb[18].mxu0 }
0x125a   :  { %v2067_v43 = vadd.f32 %v2063_v41, %v1994_v12  ;;  %v3268_v45 = vpop.f32.mrb[19].mxu0 }
0x125b   :  { %v2307_v45 = vld [vmem:[#allocation2 + $0x38] sm:$0xff] }
0x125c   :  { %v2762_v48 = vmul.f32 -1.442695, %v2067_v43 }
0x125d   :  { %v3750_v25 = vpop.eup %3749 }
0x125e   :  { %3753 = vpow2.f32 %v2762_v48  ;;  %v1662_v50 = vsel %vm4075_vm3, %v3748_v47, %v3750_v25 }
0x125f   :  { %1665 = vrot.lane.b32.xlu1 %v1662_v50, %s3946_s4  ;;  %3755 = vtanh.f32 %v1858_v40  ;;  %v1663_v6 = vmul.f32 %v1662_v50, %v4407_v46 }
0x1260   :  { %v3752_v51 = vpop.eup %3751 }
0x1261   :  { %v1865_v32 = vadd.f32 1.0, %v3752_v51 }
0x1263   :  { %3757 = vrcp.f32 %v1865_v32 }
0x1264   :  { %3759 = vtanh.f32 %v2067_v43 }
0x1268   :  { %v3754_v53 = vpop.eup %3753 }
0x1269   :  { %v2072_v36 = vadd.f32 1.0, %v3754_v53  ;;  %v3756_v54 = vpop.eup %3755 }
0x126b   :  { %3761 = vrcp.f32 %v2072_v36 }
0x126d   :  { %v3758_v56 = vpop.eup %3757 }
0x126e   :  { %v1868_v57 = vsel %vm4075_vm3, %v3756_v54, %v3758_v56  ;;  %v3760_v42 = vpop.eup %3759 }
0x126f   :  { %1871 = vrot.lane.b32.xlu0 %v1868_v57, %s3946_s4  ;;  %v1869_v11 = vmul.f32 %v1868_v57, %v4412_v63 }
0x1275   :  { %v3762_v59 = vpop.eup %3761 }
0x1276   :  { %v2075_v60 = vsel %vm4075_vm3, %v3760_v42, %v3762_v59 }
0x1277   :  { %2078 = vrot.lane.b32.xlu1 %v2075_v60, %s3946_s4  ;;  %v2076_v14 = vmul.f32 %v2075_v60, %v4416_v4 }
0x12d1   :  { %v1666_v61 = vpop.permute.xlu1 %1665 }
0x12d2   :  { %v1668_v62 = vmul.f32 %v1666_v61, %v1662_v50 }
0x12d4   :  { %1670 = vrot.lane.b32.xlu0 %v1668_v62, %s3947_s9 }
0x12e1   :  { %v1872_v49 = vpop.permute.xlu0 %1871 }
0x12e2   :  { %v1874_v2 = vmul.f32 %v1872_v49, %v1868_v57 }
0x12e4   :  { %1876 = vrot.lane.b32.xlu1 %v1874_v2, %s3947_s9 }
0x12e9   :  { %v2079_v3 = vpop.permute.xlu1 %2078 }
0x12ea   :  { %v2081_v52 = vmul.f32 %v2079_v3, %v2075_v60 }
0x12ec   :  { %2083 = vrot.lane.b32.xlu0 %v2081_v52, %s3947_s9 }
0x1346   :  { %v1671_v8 = vpop.permute.xlu0 %1670 }
0x1347   :  { %v4476_v55 = vadd.f32 %v1671_v8, %v1663_v6 }
0x1349   :  { %3763 = vtanh.f32 %v4476_v55 }
0x1353   :  { %v3764_v10 = vpop.eup %3763 }
0x1354   :  { %1676 = vrot.lane.b32.xlu1 %v3764_v10, %s3946_s4 }
0x1356   :  { %v1877_v58 = vpop.permute.xlu1 %1876 }
0x1357   :  { %v4481_v13 = vadd.f32 %v1877_v58, %v1869_v11 }
0x1359   :  { %3765 = vtanh.f32 %v4481_v13 }
0x135e   :  { %v2084_v15 = vpop.permute.xlu0 %2083 }
0x135f   :  { %v4485_v18 = vadd.f32 %v2084_v15, %v2076_v14 }
0x1361   :  { %3767 = vtanh.f32 %v4485_v18 }
0x1363   :  { %v3766_v46 = vpop.eup %3765 }
0x1364   :  { %1882 = vrot.lane.b32.xlu0 %v3766_v46, %s3946_s4 }
0x136b   :  { %v3768_v19 = vpop.eup %3767 }
0x136c   :  { %2089 = vrot.lane.b32.xlu1 %v3768_v19, %s3946_s4 }
0x13c6   :  { %v1677_v21 = vpop.permute.xlu1 %1676 }
0x13c7   :  { %v1679_v63 = vmul.f32 %v1677_v21, %v1662_v50 }
0x13c9   :  { %1891 = vrot.lane.b32.xlu1 %v1679_v63, %s3946_s4 }
0x13d6   :  { %v1883_v22 = vpop.permute.xlu0 %1882 }
0x13d7   :  { %v1885_v24 = vmul.f32 %v1883_v22, %v1868_v57 }
0x13d9   :  { %1887 = vrot.lane.b32.xlu0 %v1885_v24, %s3947_s9  ;;  %2097 = vrot.lane.b32.xlu1 %v1885_v24, %s3946_s4 }
0x13de   :  { %v2090_v4 = vpop.permute.xlu1 %2089 }
0x13df   :  { %v2092_v26 = vmul.f32 %v2090_v4, %v2075_v60 }
0x13e1   :  { %2094 = vrot.lane.b32.xlu0 %v2092_v26, %s3947_s9 }
0x143b   :  { %v1892_v28 = vpop.permute.xlu1 %1891 }
0x144b   :  { %v1888_v30 = vpop.permute.xlu0 %1887  ;;  %v2098_v37 = vpop.permute.xlu1 %2097 }
0x144c   :  { %v1894_v33 = vsel %vm89_vm4, %v1888_v30, %v1892_v28 }
0x144d   :  { %3256 = vmatmul.mubr.msk.f32.vlgmr.msra.gmra.mrb[16].mxu1 %vm209_vm5, %v1894_v33 }
0x144e   :  { %3555 = vmatpush3.bf16.msra.mxu1 %v4086_v29  ;;  %3285 = vmatprep.mubr.msk.f32.mxu1 %vm3944_vm0, %v3945_v1 }
0x144f   :  { %3556 = vmatprep.subr.bf16.mxu1 %v3943_v0 }
0x1452   :  { %3558 = vmatpush3.bf16.msra.mxu1 %v4089_v31 }
0x1453   :  { %3559 = vmatprep.subr.bf16.mxu1 %v3943_v0  ;;  %v2095_v35 = vpop.permute.xlu0 %2094 }
0x1454   :  { %v2100_v40 = vsel %vm89_vm4, %v2095_v35, %v2098_v37 }
0x1456   :  { %3561 = vmatpush3.bf16.msra.mxu1 %v4093_v34 }
0x1457   :  { %3562 = vmatprep.subr.bf16.mxu1 %v3943_v0 }
0x145a   :  { %3564 = vmatpush3.bf16.msra.mxu1 %v4098_v38 }
0x145b   :  { %3577 = vmatprep.subr.bf16.mxu1 %v3943_v0 }
0x145d   :  { %3286 = vmatmul.mubr.msk.f32.vlgmr.msra.gmra.mrb[18].mxu1 %vm209_vm5, %v2100_v40 }
0x145e   :  { %3579 = vmatpush3.bf16.msra.mxu1 %v4064_v5  ;;  %3315 = vmatprep.mubr.msk.f32.mxu1 %vm3944_vm0, %v3945_v1 }
0x145f   :  { %3580 = vmatprep.subr.bf16.mxu1 %v3943_v0 }
0x1462   :  { %3582 = vmatpush3.bf16.msra.mxu1 %v4067_v7  ;;  %v4527_v7 = vld [vmem:[%s4620_s3 + $0x1] ss:$0 sm:$0xff] }
0x1463   :  { %3595 = vmatprep.subr.bf16.mxu1 %v3943_v0 }
0x1465   :  { %3316 = vmatmul.mubr.msk.f32.vlgmr.msra.gmra.mrb[20].mxu1 %vm89_vm4, %v2095_v35 }
0x1466   :  { %3597 = vmatpush3.bf16.msra.mxu1 %v4136_v16  ;;  %3353 = vmatprep.mubr.msk.f32.mxu1 %vm3944_vm0, %v3945_v1 }
0x1467   :  { %3598 = vmatprep.subr.bf16.mxu1 %v3943_v0 }
0x146a   :  { %3600 = vmatpush3.bf16.msra.mxu1 %v4140_v20 }
0x146b   :  { %3601 = vmatprep.subr.bf16.mxu1 %v3943_v0 }
0x146e   :  { %3603 = vmatpush3.bf16.msra.mxu1 %v4146_v23 }
0x146f   :  { %3604 = vmatprep.subr.bf16.mxu1 %v3943_v0 }
0x1472   :  { %3606 = vmatpush3.bf16.msra.mxu1 %v4153_v27 }
0x1520   :  { %v1964_v5 = vpop.f32.mrb[16].mxu1 }
0x1521   :  { %v1965_v16 = vadd.f32 %v4527_v7, %v1964_v5  ;;  %v3257_v9 = vpop.f32.mrb[17].mxu1 }
0x1523   :  { %v2760_v44 = vmul.f32 -1.442695, %v1965_v16 }
0x1525   :  { %3769 = vpow2.f32 %v2760_v44 }
0x1526   :  { %3771 = vtanh.f32 %v1965_v16 }
0x152f   :  { %v3770_v20 = vpop.eup %3769 }
0x1530   :  { %v1972_v12 = vadd.f32 1.0, %v3770_v20  ;;  %v2170_v41 = vpop.f32.mrb[18].mxu1  ;;  %v3772_v50 = vpop.eup %3771 }
0x1531   :  { %v2171_v23 = vadd.f32 %v4460_v39, %v2170_v41  ;;  %v3287_v43 = vpop.f32.mrb[19].mxu1 }
0x1532   :  { %3773 = vrcp.f32 %v1972_v12 }
0x1533   :  { %v2764_v27 = vmul.f32 -1.442695, %v2171_v23 }
0x1535   :  { %3775 = vpow2.f32 %v2764_v27 }
0x1538   :  { %v2376_v47 = vpop.f32.mrb[20].mxu1 }
0x1539   :  { %v2380_v48 = vadd.f32 %v2376_v47, %v2307_v45  ;;  %v3317_v25 = vpop.f32.mrb[21].mxu1 }
0x153b   :  { %v2768_v51 = vmul.f32 -1.442695, %v2380_v48 }
0x153c   :  { %v3774_v32 = vpop.eup %3773 }
0x153d   :  { %3777 = vpow2.f32 %v2768_v51  ;;  %v1975_v53 = vsel %vm4075_vm3, %v3772_v50, %v3774_v32 }
0x153e   :  { %1978 = vrot.lane.b32.xlu0 %v1975_v53, %s3946_s4  ;;  %3779 = vtanh.f32 %v2171_v23  ;;  %v1976_v11 = vmul.f32 %v1975_v53, %v4476_v55 }
0x153f   :  { %v3776_v36 = vpop.eup %3775 }
0x1540   :  { %v2178_v54 = vadd.f32 1.0, %v3776_v36 }
0x1542   :  { %3781 = vrcp.f32 %v2178_v54 }
0x1543   :  { %3783 = vtanh.f32 %v2380_v48 }
0x1547   :  { %v3778_v56 = vpop.eup %3777 }
0x1548   :  { %v2385_v57 = vadd.f32 1.0, %v3778_v56  ;;  %v3780_v42 = vpop.eup %3779 }
0x154a   :  { %3785 = vrcp.f32 %v2385_v57 }
0x154c   :  { %v3782_v59 = vpop.eup %3781 }
0x154d   :  { %v2181_v60 = vsel %vm4075_vm3, %v3780_v42, %v3782_v59  ;;  %v3784_v61 = vpop.eup %3783 }
0x154e   :  { %2184 = vrot.lane.b32.xlu1 %v2181_v60, %s3946_s4  ;;  %v2182_v46 = vmul.f32 %v2181_v60, %v4481_v13 }
0x1554   :  { %v3786_v62 = vpop.eup %3785 }
0x1555   :  { %v2388_v49 = vsel %vm4075_vm3, %v3784_v61, %v3786_v62 }
0x1556   :  { %2391 = vrot.lane.b32.xlu0 %v2388_v49, %s3946_s4  ;;  %v2389_v63 = vmul.f32 %v2388_v49, %v4485_v18 }
0x15b0   :  { %v1979_v2 = vpop.permute.xlu0 %1978 }
0x15b1   :  { %v1981_v3 = vmul.f32 %v1979_v2, %v1975_v53 }
0x15b3   :  { %1983 = vrot.lane.b32.xlu1 %v1981_v3, %s3947_s9 }
0x15c0   :  { %v2185_v52 = vpop.permute.xlu1 %2184 }
0x15c1   :  { %v2187_v6 = vmul.f32 %v2185_v52, %v2181_v60 }
0x15c3   :  { %2189 = vrot.lane.b32.xlu0 %v2187_v6, %s3947_s9 }
0x15c8   :  { %v2392_v8 = vpop.permute.xlu0 %2391 }
0x15c9   :  { %v2394_v10 = vmul.f32 %v2392_v8, %v2388_v49 }
0x15cb   :  { %2396 = vrot.lane.b32.xlu1 %v2394_v10, %s3947_s9 }
0x1625   :  { %v1984_v58 = vpop.permute.xlu1 %1983 }
0x1626   :  { %v4544_v14 = vadd.f32 %v1984_v58, %v1976_v11 }
0x1628   :  { %3787 = vtanh.f32 %v4544_v14 }
0x1632   :  { %v3788_v15 = vpop.eup %3787 }
0x1633   :  { %1989 = vrot.lane.b32.xlu0 %v3788_v15, %s3946_s4 }
0x1635   :  { %v2190_v19 = vpop.permute.xlu0 %2189 }
0x1636   :  { %v4549_v21 = vadd.f32 %v2190_v19, %v2182_v46 }
0x1638   :  { %3789 = vtanh.f32 %v4549_v21 }
0x163d   :  { %v2397_v22 = vpop.permute.xlu1 %2396 }
0x163e   :  { %v2399_v24 = vadd.f32 %v2397_v22, %v2389_v63 }
0x1640   :  { %3791 = vtanh.f32 %v2399_v24 }
0x1642   :  { %v3790_v55 = vpop.eup %3789 }
0x1643   :  { %2195 = vrot.lane.b32.xlu1 %v3790_v55, %s3946_s4 }
0x164a   :  { %v3792_v4 = vpop.eup %3791 }
0x164b   :  { %2402 = vrot.lane.b32.xlu0 %v3792_v4, %s3946_s4 }
0x16a5   :  { %v1990_v26 = vpop.permute.xlu0 %1989 }
0x16a6   :  { %v1992_v28 = vmul.f32 %v1990_v26, %v1975_v53 }
0x16a8   :  { %2204 = vrot.lane.b32.xlu0 %v1992_v28, %s3946_s4  ;;  %v2619_v28 = vld [vmem:[#allocation8] sm:$0xff] }
0x16b5   :  { %v2196_v13 = vpop.permute.xlu1 %2195 }
0x16b6   :  { %v2198_v30 = vmul.f32 %v2196_v13, %v2181_v60  ;;  %v2620_v13 = vld [vmem:[#allocation8 + $0x8] sm:$0xff] }
0x16b8   :  { %2200 = vrot.lane.b32.xlu1 %v2198_v30, %s3947_s9  ;;  %2410 = vrot.lane.b32.xlu0 %v2198_v30, %s3946_s4  ;;  %v2621_v30 = vld [vmem:[#allocation8 + $0x10] sm:$0xff] }
0x16bd   :  { %v2403_v18 = vpop.permute.xlu0 %2402 }
0x16be   :  { %v2405_v33 = vmul.f32 %v2403_v18, %v2388_v49  ;;  %v3608_v18 = vpack.c.bf16 %v2620_v13, %v2619_v28 }
0x16c0   :  { %2407 = vrot.lane.b32.xlu1 %v2405_v33, %s3947_s9  ;;  %v2622_v33 = vld [vmem:[#allocation8 + $0x18] sm:$0xff] }
0x171a   :  { %v2205_v35 = vpop.permute.xlu0 %2204 }
0x172a   :  { %v2201_v37 = vpop.permute.xlu1 %2200  ;;  %v2411_v16 = vpop.permute.xlu0 %2410 }
0x172b   :  { %v2207_v40 = vsel %vm89_vm4, %v2201_v37, %v2205_v35  ;;  %v3611_v35 = vpack.c.bf16 %v2622_v33, %v2621_v30 }
0x172c   :  { %3305 = vmatmul.mubr.msk.f32.vlgmr.msra.gmra.mrb[20].mxu0 %vm209_vm5, %v2207_v40 }
0x172d   :  { %3585 = vmatpush3.bf16.msra.mxu0 %v4086_v29  ;;  %3334 = vmatprep.mubr.msk.f32.mxu0 %vm3944_vm0, %v3945_v1 }
0x172e   :  { %3586 = vmatprep.subr.bf16.mxu0 %v3943_v0 }
0x1731   :  { %3588 = vmatpush3.bf16.msra.mxu0 %v4089_v31 }
0x1732   :  { %3589 = vmatprep.subr.bf16.mxu0 %v3943_v0  ;;  %v2408_v5 = vpop.permute.xlu1 %2407 }
0x1733   :  { %v2413_v29 = vsel %vm89_vm4, %v2408_v5, %v2411_v16  ;;  %v2773_v16 = vld [vmem:[%s4622_s5] ss:$0 sm:$0xff] }
0x1735   :  { %3591 = vmatpush3.bf16.msra.mxu0 %v4093_v34 }
0x1736   :  { %3592 = vmatprep.subr.bf16.mxu0 %v3943_v0 }
0x1739   :  { %3594 = vmatpush3.bf16.msra.mxu0 %v4098_v38 }
0x173a   :  { %3607 = vmatprep.subr.bf16.mxu0 %v3943_v0 }
0x173c   :  { %3335 = vmatmul.mubr.msk.f32.vlgmr.msra.gmra.mrb[22].mxu0 %vm209_vm5, %v2413_v29 }
0x173d   :  { %3364 = vmatprep.mubr.msk.f32.mxu0 %vm3944_vm0, %v3945_v1  ;;  %3609 = vmatpush3.bf16.msra.mxu0 %v3608_v18 }
0x173e   :  { %3610 = vmatprep.subr.bf16.mxu0 %v3943_v0 }
0x1741   :  { %3612 = vmatpush3.bf16.msra.mxu0 %v3611_v35 }
0x17ff   :  { %v2277_v31 = vpop.f32.mrb[20].mxu0 }
0x1800   :  { %v2278_v9 = vadd.f32 %v4527_v7, %v2277_v31  ;;  %v3306_v44 = vpop.f32.mrb[21].mxu0 }
0x1802   :  { %v2766_v34 = vmul.f32 -1.442695, %v2278_v9 }
0x1804   :  { %3793 = vpow2.f32 %v2766_v34 }
0x1805   :  { %3795 = vtanh.f32 %v2278_v9 }
0x180e   :  { %v3794_v20 = vpop.eup %3793 }
0x180f   :  { %v2285_v12 = vadd.f32 1.0, %v3794_v20  ;;  %v2483_v41 = vpop.f32.mrb[22].mxu0  ;;  %v3796_v27 = vpop.eup %3795 }
0x1810   :  { %v2484_v38 = vadd.f32 %v4460_v39, %v2483_v41  ;;  %v3336_v23 = vpop.f32.mrb[23].mxu0 }
0x1811   :  { %3797 = vrcp.f32 %v2285_v12 }
0x1812   :  { %v2770_v43 = vmul.f32 -1.442695, %v2484_v38 }
0x1814   :  { %3799 = vpow2.f32 %v2770_v43 }
0x1815   :  { %3801 = vtanh.f32 %v2484_v38 }
0x181b   :  { %v3798_v45 = vpop.eup %3797 }
0x181c   :  { %v2288_v1 = vsel %vm4075_vm3, %v3796_v27, %v3798_v45 }
0x181d   :  { %2291 = vrot.lane.b32.xlu1 %v2288_v1, %s3946_s4  ;;  %v2289_v54 = vmul.f32 %v2288_v1, %v4544_v14 }
0x181e   :  { %v3800_v47 = vpop.eup %3799 }
0x181f   :  { %v2491_v48 = vadd.f32 1.0, %v3800_v47  ;;  %v3802_v25 = vpop.eup %3801 }
0x1821   :  { %3803 = vrcp.f32 %v2491_v48 }
0x182b   :  { %v3804_v50 = vpop.eup %3803 }
0x182c   :  { %v2494_v39 = vsel %vm4075_vm3, %v3802_v25, %v3804_v50 }
0x182d   :  { %2497 = vrot.lane.b32.xlu0 %v2494_v39, %s3946_s4  ;;  %v2495_v59 = vmul.f32 %v2494_v39, %v4549_v21 }
0x188f   :  { %v2292_v51 = vpop.permute.xlu1 %2291 }
0x1890   :  { %v2294_v32 = vmul.f32 %v2292_v51, %v2288_v1 }
0x1892   :  { %2296 = vrot.lane.b32.xlu1 %v2294_v32, %s3947_s9 }
0x189f   :  { %v2498_v53 = vpop.permute.xlu0 %2497 }
0x18a0   :  { %v2500_v36 = vmul.f32 %v2498_v53, %v2494_v39 }
0x18a2   :  { %2502 = vrot.lane.b32.xlu0 %v2500_v36, %s3947_s9 }
0x1904   :  { %v2297_v56 = vpop.permute.xlu1 %2296 }
0x1905   :  { %v2299_v57 = vadd.f32 %v2297_v56, %v2289_v54 }
0x1907   :  { %3805 = vtanh.f32 %v2299_v57 }
0x1911   :  { %v3806_v42 = vpop.eup %3805 }
0x1912   :  { %2302 = vrot.lane.b32.xlu1 %v3806_v42, %s3946_s4 }
0x1914   :  { %v2503_v60 = vpop.permute.xlu0 %2502 }
0x1915   :  { %v2505_v61 = vadd.f32 %v2503_v60, %v2495_v59 }
0x1917   :  { %3807 = vtanh.f32 %v2505_v61 }
0x1921   :  { %v3808_v62 = vpop.eup %3807 }
0x1922   :  { %2508 = vrot.lane.b32.xlu0 %v3808_v62, %s3946_s4 }
0x1984   :  { %v2303_v49 = vpop.permute.xlu1 %2302 }
0x1985   :  { %v2305_v2 = vmul.f32 %v2303_v49, %v2288_v1 }
0x1987   :  { %2517 = vrot.lane.b32.xlu0 %v2305_v2, %s3946_s4 }
0x1994   :  { %v2509_v3 = vpop.permute.xlu0 %2508 }
0x1995   :  { %v2511_v52 = vmul.f32 %v2509_v3, %v2494_v39 }
0x1997   :  { %2513 = vrot.lane.b32.xlu1 %v2511_v52, %s3947_s9 }
0x19f9   :  { %v2518_v6 = vpop.permute.xlu0 %2517 }
0x1a09   :  { %v2514_v8 = vpop.permute.xlu1 %2513 }
0x1a0a   :  { %v2520_v10 = vsel %vm89_vm4, %v2514_v8, %v2518_v6 }
0x1a0b   :  { %3354 = vmatmul.mubr.msk.f32.vlgmr.msra.gmra.mrb[22].mxu1 %vm209_vm5, %v2520_v10 }
0x1ade   :  { %v2590_v11 = vpop.f32.mrb[22].mxu1 }
0x1adf   :  { %v2591_v58 = vadd.f32 %v4527_v7, %v2590_v11  ;;  %v3355_v14 = vpop.f32.mrb[23].mxu1 }
0x1ae1   :  { %v2772_v15 = vmul.f32 -1.442695, %v2591_v58 }
0x1ae3   :  { %3809 = vpow2.f32 %v2772_v15 }
0x1ae4   :  { %3811 = vtanh.f32 %v2591_v58 }
0x1aed   :  { %v3810_v46 = vpop.eup %3809 }
0x1aee   :  { %v2598_v19 = vadd.f32 1.0, %v3810_v46  ;;  %v3812_v21 = vpop.eup %3811 }
0x1af0   :  { %3813 = vrcp.f32 %v2598_v19 }
0x1afa   :  { %v3814_v63 = vpop.eup %3813 }
0x1afb   :  { %v2601_v22 = vsel %vm4075_vm3, %v3812_v21, %v3814_v63 }
0x1afc   :  { %2604 = vrot.lane.b32.xlu1 %v2601_v22, %s3946_s4  ;;  %v2602_v4 = vmul.f32 %v2601_v22, %v2299_v57 }
0x1b6e   :  { %v2605_v24 = vpop.permute.xlu1 %2604 }
0x1b6f   :  { %v2607_v55 = vmul.f32 %v2605_v24, %v2601_v22 }
0x1b71   :  { %2609 = vrot.lane.b32.xlu0 %v2607_v55, %s3947_s9 }
0x1be3   :  { %v2610_v7 = vpop.permute.xlu0 %2609 }
0x1be4   :  { %v2612_v26 = vadd.f32 %v2610_v7, %v2602_v4 }
0x1be6   :  { %3815 = vtanh.f32 %v2612_v26 }
0x1bf0   :  { %v3816_v17 = vpop.eup %3815 }
0x1bf1   :  { %2615 = vrot.lane.b32.xlu1 %v3816_v17, %s3946_s4 }
0x1c63   :  { %v2616_v37 = vpop.permute.xlu1 %2615 }
0x1c64   :  { %v2618_v40 = vmul.f32 %v2616_v37, %v2601_v22 }
0x1c66   :  { %2631 = vrot.lane.b32.xlu0 %v2618_v40, %s3947_s9 }
0x1cd8   :  { %v2632_v5 = vpop.permute.xlu0 %2631 }
0x1cd9   :  { %3365 = vmatmul.mubr.msk.f32.vlgmr.msra.gmra.mrb[24].mxu0 %vm89_vm4, %v2632_v5 }
0x1dac   :  { %v2701_v29 = vpop.f32.mrb[24].mxu0 }
0x1dad   :  { %v2702_v31 = vadd.f32 %v2773_v16, %v2701_v29  ;;  %v3366_v0 = vpop.f32.mrb[25].mxu0 }
0x1daf   :  { %2705 = vst [vmem:[#allocation10] sm:$0xff] %v2702_v31 }
0x1db0   :  { %3918 = shalt.err (!%p3915_p8)
}
0x1db1   :  { %s3919_s24 = scalar_lea.hbm %s4623_s6, 128 }
0x1db2   :  { %p3920_p9 = scmp.ne.s32.totalorder %s4623_s6, %s3919_s24  ;;  %p3923_p10 = scmp.lt.u32.totalorder %s3919_s24, %s4623_s6 }
0x1db4   :  { %p3925_p11 = pnand %p3923_p10, %p3920_p9 }
0x1db6   :  { %3928 = shalt.err (!%p3925_p11)
}
0x1db7   :  { %2715 = dma.vmem_to_hbm [thread:$0]  %s2713_s7, 128, %s4623_s6, [#allocation4]  }
0x1db8   :  { %3935 = dma.done.wait [#allocation4], 128  }
0x1db9   :  { %3936 = vsyncadd [#allocation4], 4294967168 }
0x1dba   :  { %2719 = vsyncpa [#allocation3], 1 }
0x1dbb   :  { %2720 = vsyncpa [#allocation6], 1 }
0x1dbc   :  { %2721 = vsyncpa [#allocation9], 1 }
0x1dbd   :  { %2722 = vsyncpa [#allocation4], 1 }

</bundles_post_ra>
